<compile_context>
chip_gen: v7x
topology: tpu7x:2x2x1
jax: 0.10.0
libtpu: 0.0.40
codegen_flags: <defaults>
</compile_context>

<pallas_src>
import math
import numpy as np
import jax
import jax.numpy as jnp
from jax.experimental import pallas as pl
from jax.experimental.pallas import tpu as pltpu

# ------------- model hyper-parameters (small, consistent with the module) -----
B = 2        # batch
TQ = 8       # target (decoder) sequence length
TS = 8       # source (memory) sequence length
D = 32       # d_model ("size")
H = 4        # attention heads
DK = D // H
DFF = 64     # feed-forward hidden
EPS = 1e-6
SCALE = 1.0 / math.sqrt(DK)

# Column offsets inside the packed weight / bias slabs (see _pack below).
W_QKV1 = 0            # (32, 96)   fused self-attn Q|K|V
W_O1 = 96             # (32, 32)   self-attn output projection
W_Q2 = 128            # (32, 32)   cross-attn Q
W_KV2 = 160           # (32, 64)   fused cross-attn K|V
W_O2 = 224            # (32, 32)   cross-attn output projection
W_FF1 = 256           # (32, 64)   FFN first layer
W_END = 320

B_QKV1 = 0            # (1, 96)
B_O1 = 96             # (1, 32)
B_Q2 = 128            # (1, 32)
B_KV2 = 160           # (1, 64)
B_O2 = 224            # (1, 32)
B_FF1 = 256           # (1, 64)
B_FF2 = 320           # (1, 32)
B_END = 352


# ------------------------------- Pallas kernel --------------------------------
def decoder_layer_kernel(x_ref, m_ref, tgt_ref, src_ref,
                         w_ref, w2_ref, b_ref, ln_ref, o_ref):
    x = x_ref[...]                              # (B*TQ, D)
    m = m_ref[...]                              # (B*TS, D)

    # Boolean keep-masks, hoisted once per kernel invocation.
    tgt_keep = tgt_ref[...] != 0.0              # (B, TQ, TQ)
    src_keep = src_ref[...] != 0.0              # (B, 1, TS)

    # TODO(synk): nn.Dropout is treated as identity (eval mode).

    def layer_norm(v, i):
        # PyTorch-module LayerNorm: unbiased std (N-1), eps added to the std.
        a = ln_ref[i:i + 1, :]                  # (1, D)
        b = ln_ref[3 + i:4 + i, :]              # (1, D)
        mean = jnp.mean(v, axis=-1, keepdims=True)
        vc = v - mean
        var = jnp.sum(vc * vc, axis=-1, keepdims=True) * (1.0 / (D - 1))
        return a * vc / (jnp.sqrt(var) + EPS) + b

    def attend(q3, k3, v3, q_off, k_off, v_off, keep):
        # q3: (B, TQ, *), k3/v3: (B, Tk, *); per-head columns carved statically.
        ctx_heads = []
        for h in range(H):
            qh = q3[:, :, q_off + h * DK: q_off + (h + 1) * DK]   # (B, TQ, DK)
            kh = k3[:, :, k_off + h * DK: k_off + (h + 1) * DK]   # (B, Tk, DK)
            vh = v3[:, :, v_off + h * DK: v_off + (h + 1) * DK]   # (B, Tk, DK)
            s = jnp.einsum("bqe,bke->bqk", qh, kh,
                           preferred_element_type=jnp.float32) * SCALE
            s = jnp.where(keep, s, -1e9)
            s = s - jnp.max(s, axis=-1, keepdims=True)
            p = jnp.exp(s)
            p = p * pl.reciprocal(jnp.sum(p, axis=-1, keepdims=True), approx=True)
            ctx_heads.append(jnp.einsum("bqk,bke->bqe", p, vh,
                                        preferred_element_type=jnp.float32))
        # Head-concat back to (B*TQ, D); the single output projection follows outside.
        return jnp.concatenate(ctx_heads, axis=-1).reshape(B * TQ, D)

    # --- sublayer 0: self-attention (pre-norm + residual) ---
    xn = layer_norm(x, 0)
    qkv = jnp.dot(xn, w_ref[:, W_QKV1:W_O1],
                  preferred_element_type=jnp.float32) + b_ref[:, B_QKV1:B_O1]   # (16, 96)
    qkv3 = qkv.reshape(B, TQ, 3 * D)
    ctx = attend(qkv3, qkv3, qkv3, 0, D, 2 * D, tgt_keep)
    x = x + jnp.dot(ctx, w_ref[:, W_O1:W_Q2],
                    preferred_element_type=jnp.float32) + b_ref[:, B_O1:B_Q2]

    # --- sublayer 1: source (cross) attention ---
    xn = layer_norm(x, 1)
    q = jnp.dot(xn, w_ref[:, W_Q2:W_KV2],
                preferred_element_type=jnp.float32) + b_ref[:, B_Q2:B_KV2]      # (16, 32)
    kv = jnp.dot(m, w_ref[:, W_KV2:W_O2],
                 preferred_element_type=jnp.float32) + b_ref[:, B_KV2:B_O2]     # (16, 64)
    q3 = q.reshape(B, TQ, D)
    kv3 = kv.reshape(B, TS, 2 * D)
    ctx = attend(q3, kv3, kv3, 0, 0, D, src_keep)
    x = x + jnp.dot(ctx, w_ref[:, W_O2:W_FF1],
                    preferred_element_type=jnp.float32) + b_ref[:, B_O2:B_FF1]

    # --- sublayer 2: position-wise feed-forward ---
    xn = layer_norm(x, 2)
    hid = jnp.maximum(
        jnp.dot(xn, w_ref[:, W_FF1:W_END],
                preferred_element_type=jnp.float32) + b_ref[:, B_FF1:B_FF2], 0.0)
    x = x + jnp.dot(hid, w2_ref[...],
                    preferred_element_type=jnp.float32) + b_ref[:, B_FF2:B_END]

    o_ref[...] = x


# --------------------------------- wrapper ------------------------------------
def _pack(p):
    wqkv1 = jnp.concatenate([p["wq1"], p["wk1"], p["wv1"]], axis=1)     # (32, 96)
    bqkv1 = jnp.concatenate([p["bq1"], p["bk1"], p["bv1"]], axis=1)     # (1, 96)
    wkv2 = jnp.concatenate([p["wk2"], p["wv2"]], axis=1)                # (32, 64)
    bkv2 = jnp.concatenate([p["bk2"], p["bv2"]], axis=1)                # (1, 64)

    w_slab = jnp.concatenate(
        [wqkv1, p["wo1"], p["wq2"], wkv2, p["wo2"], p["w1"]], axis=1)   # (32, 320)
    b_slab = jnp.concatenate(
        [bqkv1, p["bo1"], p["bq2"], bkv2, p["bo2"], p["b1"], p["b2"]],
        axis=1)                                                         # (1, 352)
    ln_slab = jnp.concatenate(
        [p["ln1_a"], p["ln2_a"], p["ln3_a"],
         p["ln1_b"], p["ln2_b"], p["ln3_b"]], axis=0)                   # (6, 32)
    return w_slab, p["w2"], b_slab, ln_slab


@jax.jit
def decoder_layer(x, memory, src_mask, tgt_mask, params):
    w_slab, w2, b_slab, ln_slab = _pack(params)
    x_flat = x.reshape(B * TQ, D)
    m_flat = memory.reshape(B * TS, D)

    vmem = pl.BlockSpec(memory_space=pltpu.MemorySpace.VMEM)
    out = pl.pallas_call(
        decoder_layer_kernel,
        out_shape=jax.ShapeDtypeStruct((B * TQ, D), jnp.float32),
        in_specs=[vmem] * 8,
        out_specs=vmem,
    )(x_flat, m_flat, tgt_mask, src_mask, w_slab, w2, b_slab, ln_slab)
    return out.reshape(B, TQ, D)


# --------------------------- pure-JAX reference --------------------------------
def reference(x, memory, src_mask, tgt_mask, p):
    def ln(x, a, b):
        mean = jnp.mean(x, axis=-1, keepdims=True)
        var = jnp.sum((x - mean) ** 2, axis=-1, keepdims=True) / (D - 1)
        return a * (x - mean) / (jnp.sqrt(var) + EPS) + b

    def mha(q_in, k_in, v_in, mask, wq, bq, wk, bk, wv, bv, wo, bo):
        q = q_in @ wq + bq
        k = k_in @ wk + bk
        v = v_in @ wv + bv
        Tq, Tk = q.shape[1], k.shape[1]
        qh = q.reshape(B, Tq, H, DK).transpose(0, 2, 1, 3)
        kh = k.reshape(B, Tk, H, DK).transpose(0, 2, 1, 3)
        vh = v.reshape(B, Tk, H, DK).transpose(0, 2, 1, 3)
        scores = jnp.einsum("bhqd,bhkd->bhqk", qh, kh) / jnp.sqrt(jnp.float32(DK))
        scores = jnp.where(mask[:, None, :, :] == 0.0, -1e9, scores)
        pattn = jax.nn.softmax(scores, axis=-1)
        out = jnp.einsum("bhqk,bhkd->bhqd", pattn, vh)
        out = out.transpose(0, 2, 1, 3).reshape(B, Tq, D)
        return out @ wo + bo

    xn = ln(x, p["ln1_a"], p["ln1_b"])
    x = x + mha(xn, xn, xn, tgt_mask,
                p["wq1"], p["bq1"], p["wk1"], p["bk1"],
                p["wv1"], p["bv1"], p["wo1"], p["bo1"])
    xn = ln(x, p["ln2_a"], p["ln2_b"])
    x = x + mha(xn, memory, memory, src_mask,
                p["wq2"], p["bq2"], p["wk2"], p["bk2"],
                p["wv2"], p["bv2"], p["wo2"], p["bo2"])
    xn = ln(x, p["ln3_a"], p["ln3_b"])
    x = x + jnp.maximum(xn @ p["w1"] + p["b1"], 0.0) @ p["w2"] + p["b2"]
    return x


# ----------------------------------- main --------------------------------------
if __name__ == "__main__":
    key = jax.random.PRNGKey(0)
    ks = jax.random.split(key, 32)
    ki = iter(ks)

    def nrm(k, shape, scale=0.1):
        return (scale * jax.random.normal(k, shape)).astype(jnp.float32)

    params = {
        # LayerNorm params (nn.Parameter(ones/zeros) init)
        "ln1_a": jnp.ones((1, D), jnp.float32), "ln1_b": jnp.zeros((1, D), jnp.float32),
        "ln2_a": jnp.ones((1, D), jnp.float32), "ln2_b": jnp.zeros((1, D), jnp.float32),
        "ln3_a": jnp.ones((1, D), jnp.float32), "ln3_b": jnp.zeros((1, D), jnp.float32),
        # self-attention linears (stored as (in, out); y = x @ W + b)
        "wq1": nrm(next(ki), (D, D)), "bq1": nrm(next(ki), (1, D)),
        "wk1": nrm(next(ki), (D, D)), "bk1": nrm(next(ki), (1, D)),
        "wv1": nrm(next(ki), (D, D)), "bv1": nrm(next(ki), (1, D)),
        "wo1": nrm(next(ki), (D, D)), "bo1": nrm(next(ki), (1, D)),
        # source (cross) attention linears
        "wq2": nrm(next(ki), (D, D)), "bq2": nrm(next(ki), (1, D)),
        "wk2": nrm(next(ki), (D, D)), "bk2": nrm(next(ki), (1, D)),
        "wv2": nrm(next(ki), (D, D)), "bv2": nrm(next(ki), (1, D)),
        "wo2": nrm(next(ki), (D, D)), "bo2": nrm(next(ki), (1, D)),
        # position-wise feed-forward
        "w1": nrm(next(ki), (D, DFF)), "b1": nrm(next(ki), (1, DFF)),
        "w2": nrm(next(ki), (DFF, D)), "b2": nrm(next(ki), (1, D)),
    }

    x = nrm(next(ki), (B, TQ, D), scale=1.0)
    memory = nrm(next(ki), (B, TS, D), scale=1.0)
    # causal target mask (1 = attend, 0 = masked), full source mask
    tgt_mask = jnp.tril(jnp.ones((TQ, TQ), jnp.float32))[None].repeat(B, axis=0)
    src_mask = jnp.ones((B, 1, TS), jnp.float32)

    out = decoder_layer(x, memory, src_mask, tgt_mask, params)
    out = jax.block_until_ready(out)

    ref = reference(x, memory, src_mask, tgt_mask, params)
    np.testing.assert_allclose(np.asarray(out), np.asarray(ref), rtol=2e-3, atol=2e-3)

    print("KERNEL_OK")
</pallas_src>

<mosaic_0001>
module attributes {stable_mosaic.version = 11 : i64} {
  func.func @decoder_layer_kernel(%arg0: memref<16x32xf32, #tpu.memory_space<vmem>>, %arg1: memref<16x32xf32, #tpu.memory_space<vmem>>, %arg2: memref<2x8x8xf32, #tpu.memory_space<vmem>>, %arg3: memref<2x1x8xf32, #tpu.memory_space<vmem>>, %arg4: memref<32x320xf32, #tpu.memory_space<vmem>>, %arg5: memref<64x32xf32, #tpu.memory_space<vmem>>, %arg6: memref<1x352xf32, #tpu.memory_space<vmem>>, %arg7: memref<6x32xf32, #tpu.memory_space<vmem>>, %arg8: memref<16x32xf32, #tpu.memory_space<vmem>>) attributes {dimension_semantics = [], scalar_prefetch = 0 : i64, scratch_operands = 0 : i64, tpu.core_type = #tpu.core_type<tc>} {
    %c0 = arith.constant 0 : index
    %c0_0 = arith.constant 0 : index
    %0 = vector.load %arg0[%c0, %c0_0] : memref<16x32xf32, #tpu.memory_space<vmem>>, vector<16x32xf32>
    %c0_1 = arith.constant 0 : index
    %c0_2 = arith.constant 0 : index
    %1 = vector.load %arg1[%c0_1, %c0_2] : memref<16x32xf32, #tpu.memory_space<vmem>>, vector<16x32xf32>
    %c0_3 = arith.constant 0 : index
    %c0_4 = arith.constant 0 : index
    %c0_5 = arith.constant 0 : index
    %2 = vector.load %arg2[%c0_3, %c0_4, %c0_5] : memref<2x8x8xf32, #tpu.memory_space<vmem>>, vector<2x8x8xf32>
    %cst = arith.constant 0.000000e+00 : f32
    %3 = vector.broadcast %cst : f32 to vector<2x8x8xf32>
    %4 = arith.cmpf one, %2, %3 : vector<2x8x8xf32>
    %c0_6 = arith.constant 0 : index
    %c0_7 = arith.constant 0 : index
    %c0_8 = arith.constant 0 : index
    %5 = vector.load %arg3[%c0_6, %c0_7, %c0_8] : memref<2x1x8xf32, #tpu.memory_space<vmem>>, vector<2x1x8xf32>
    %cst_9 = arith.constant 0.000000e+00 : f32
    %6 = vector.broadcast %cst_9 : f32 to vector<2x1x8xf32>
    %7 = arith.cmpf one, %5, %6 : vector<2x1x8xf32>
    %c0_10 = arith.constant 0 : index
    %c0_11 = arith.constant 0 : index
    %8 = vector.load %arg7[%c0_10, %c0_11] : memref<6x32xf32, #tpu.memory_space<vmem>>, vector<1x32xf32>
    %c3 = arith.constant 3 : index
    %c0_12 = arith.constant 0 : index
    %9 = vector.load %arg7[%c3, %c0_12] : memref<6x32xf32, #tpu.memory_space<vmem>>, vector<1x32xf32>
    %cst_13 = arith.constant dense<0.000000e+00> : vector<16xf32>
    %10 = vector.multi_reduction <add>, %0, %cst_13 [1] : vector<16x32xf32> to vector<16xf32>
    %11 = vector.shape_cast %10 : vector<16xf32> to vector<16x1xf32>
    %cst_14 = arith.constant 3.200000e+01 : f32
    %12 = vector.broadcast %cst_14 : f32 to vector<16x1xf32>
    %13 = arith.divf %11, %12 : vector<16x1xf32>
    %14 = vector.broadcast %13 : vector<16x1xf32> to vector<16x32xf32>
    %15 = arith.subf %0, %14 : vector<16x32xf32>
    %16 = arith.mulf %15, %15 : vector<16x32xf32>
    %cst_15 = arith.constant dense<0.000000e+00> : vector<16xf32>
    %17 = vector.multi_reduction <add>, %16, %cst_15 [1] : vector<16x32xf32> to vector<16xf32>
    %18 = vector.shape_cast %17 : vector<16xf32> to vector<16x1xf32>
    %cst_16 = arith.constant 0.0322580636 : f32
    %19 = vector.broadcast %cst_16 : f32 to vector<16x1xf32>
    %20 = arith.mulf %18, %19 : vector<16x1xf32>
    %21 = vector.broadcast %8 : vector<1x32xf32> to vector<16x32xf32>
    %22 = arith.mulf %21, %15 : vector<16x32xf32>
    %23 = math.sqrt %20 : vector<16x1xf32>
    %cst_17 = arith.constant 9.99999997E-7 : f32
    %24 = vector.broadcast %cst_17 : f32 to vector<16x1xf32>
    %25 = arith.addf %23, %24 : vector<16x1xf32>
    %26 = vector.broadcast %25 : vector<16x1xf32> to vector<16x32xf32>
    %27 = arith.divf %22, %26 : vector<16x32xf32>
    %28 = vector.broadcast %9 : vector<1x32xf32> to vector<16x32xf32>
    %29 = arith.addf %27, %28 : vector<16x32xf32>
    %c0_18 = arith.constant 0 : index
    %c0_19 = arith.constant 0 : index
    %30 = vector.load %arg4[%c0_18, %c0_19] : memref<32x320xf32, #tpu.memory_space<vmem>>, vector<32x96xf32>
    %cst_20 = arith.constant dense<0.000000e+00> : vector<16x96xf32>
    %31 = tpu.matmul %29, %30, %cst_20 {dimension_numbers = #tpu.dot_dimension_numbers<[1], [0], [0], [1], [0, 0, 1, 1], [], []>} : vector<16x32xf32>, vector<32x96xf32>, vector<16x96xf32> -> vector<16x96xf32>
    %c0_21 = arith.constant 0 : index
    %c0_22 = arith.constant 0 : index
    %32 = vector.load %arg6[%c0_21, %c0_22] : memref<1x352xf32, #tpu.memory_space<vmem>>, vector<1x96xf32>
    %33 = vector.broadcast %32 : vector<1x96xf32> to vector<16x96xf32>
    %34 = arith.addf %31, %33 : vector<16x96xf32>
    %35 = vector.shape_cast %34 : vector<16x96xf32> to vector<2x8x96xf32>
    %36 = vector.extract_strided_slice %35 {offsets = [0, 0, 0], sizes = [2, 8, 8], strides = [1, 1, 1]} : vector<2x8x96xf32> to vector<2x8x8xf32>
    %37 = vector.extract_strided_slice %35 {offsets = [0, 0, 32], sizes = [2, 8, 8], strides = [1, 1, 1]} : vector<2x8x96xf32> to vector<2x8x8xf32>
    %38 = vector.extract_strided_slice %35 {offsets = [0, 0, 64], sizes = [2, 8, 8], strides = [1, 1, 1]} : vector<2x8x96xf32> to vector<2x8x8xf32>
    "tpu.trace_start"() <{level = 10 : i32, message = "bqe,bke->bqk"}> : () -> ()
    %cst_23 = arith.constant dense<0.000000e+00> : vector<2x8x8xf32>
    %39 = tpu.matmul %36, %37, %cst_23 {dimension_numbers = #tpu.dot_dimension_numbers<[2], [2], [1], [1], [0, 0, 0, 1, 1, 1], [0], [0]>} : vector<2x8x8xf32>, vector<2x8x8xf32>, vector<2x8x8xf32> -> vector<2x8x8xf32>
    "tpu.trace_stop"() : () -> ()
    %cst_24 = arith.constant 0.353553385 : f32
    %40 = vector.broadcast %cst_24 : f32 to vector<2x8x8xf32>
    %41 = arith.mulf %39, %40 : vector<2x8x8xf32>
    %cst_25 = arith.constant -1.000000e+09 : f32
    %42 = vector.broadcast %cst_25 : f32 to vector<2x8x8xf32>
    %43 = arith.select %4, %41, %42 : vector<2x8x8xi1>, vector<2x8x8xf32>
    %cst_26 = arith.constant dense<0xFF800000> : vector<2x8xf32>
    %44 = vector.multi_reduction <maximumf>, %43, %cst_26 [2] : vector<2x8x8xf32> to vector<2x8xf32>
    %45 = vector.shape_cast %44 : vector<2x8xf32> to vector<2x8x1xf32>
    %46 = vector.broadcast %45 : vector<2x8x1xf32> to vector<2x8x8xf32>
    %47 = arith.subf %43, %46 : vector<2x8x8xf32>
    %48 = math.exp %47 : vector<2x8x8xf32>
    %cst_27 = arith.constant dense<0.000000e+00> : vector<2x8xf32>
    %49 = vector.multi_reduction <add>, %48, %cst_27 [2] : vector<2x8x8xf32> to vector<2x8xf32>
    %50 = vector.shape_cast %49 : vector<2x8xf32> to vector<2x8x1xf32>
    %51 = tpu.reciprocal %50 {approx = true} : vector<2x8x1xf32> -> vector<2x8x1xf32>
    %52 = vector.broadcast %51 : vector<2x8x1xf32> to vector<2x8x8xf32>
    %53 = arith.mulf %48, %52 : vector<2x8x8xf32>
    "tpu.trace_start"() <{level = 10 : i32, message = "bqk,bke->bqe"}> : () -> ()
    %cst_28 = arith.constant dense<0.000000e+00> : vector<2x8x8xf32>
    %54 = tpu.matmul %53, %38, %cst_28 {dimension_numbers = #tpu.dot_dimension_numbers<[2], [1], [1], [2], [0, 0, 0, 1, 1, 2], [0], [0]>} : vector<2x8x8xf32>, vector<2x8x8xf32>, vector<2x8x8xf32> -> vector<2x8x8xf32>
    "tpu.trace_stop"() : () -> ()
    %55 = vector.extract_strided_slice %35 {offsets = [0, 0, 8], sizes = [2, 8, 8], strides = [1, 1, 1]} : vector<2x8x96xf32> to vector<2x8x8xf32>
    %56 = vector.extract_strided_slice %35 {offsets = [0, 0, 40], sizes = [2, 8, 8], strides = [1, 1, 1]} : vector<2x8x96xf32> to vector<2x8x8xf32>
    %57 = vector.extract_strided_slice %35 {offsets = [0, 0, 72], sizes = [2, 8, 8], strides = [1, 1, 1]} : vector<2x8x96xf32> to vector<2x8x8xf32>
    "tpu.trace_start"() <{level = 10 : i32, message = "bqe,bke->bqk"}> : () -> ()
    %cst_29 = arith.constant dense<0.000000e+00> : vector<2x8x8xf32>
    %58 = tpu.matmul %55, %56, %cst_29 {dimension_numbers = #tpu.dot_dimension_numbers<[2], [2], [1], [1], [0, 0, 0, 1, 1, 1], [0], [0]>} : vector<2x8x8xf32>, vector<2x8x8xf32>, vector<2x8x8xf32> -> vector<2x8x8xf32>
    "tpu.trace_stop"() : () -> ()
    %cst_30 = arith.constant 0.353553385 : f32
    %59 = vector.broadcast %cst_30 : f32 to vector<2x8x8xf32>
    %60 = arith.mulf %58, %59 : vector<2x8x8xf32>
    %cst_31 = arith.constant -1.000000e+09 : f32
    %61 = vector.broadcast %cst_31 : f32 to vector<2x8x8xf32>
    %62 = arith.select %4, %60, %61 : vector<2x8x8xi1>, vector<2x8x8xf32>
    %cst_32 = arith.constant dense<0xFF800000> : vector<2x8xf32>
    %63 = vector.multi_reduction <maximumf>, %62, %cst_32 [2] : vector<2x8x8xf32> to vector<2x8xf32>
    %64 = vector.shape_cast %63 : vector<2x8xf32> to vector<2x8x1xf32>
    %65 = vector.broadcast %64 : vector<2x8x1xf32> to vector<2x8x8xf32>
    %66 = arith.subf %62, %65 : vector<2x8x8xf32>
    %67 = math.exp %66 : vector<2x8x8xf32>
    %cst_33 = arith.constant dense<0.000000e+00> : vector<2x8xf32>
    %68 = vector.multi_reduction <add>, %67, %cst_33 [2] : vector<2x8x8xf32> to vector<2x8xf32>
    %69 = vector.shape_cast %68 : vector<2x8xf32> to vector<2x8x1xf32>
    %70 = tpu.reciprocal %69 {approx = true} : vector<2x8x1xf32> -> vector<2x8x1xf32>
    %71 = vector.broadcast %70 : vector<2x8x1xf32> to vector<2x8x8xf32>
    %72 = arith.mulf %67, %71 : vector<2x8x8xf32>
    "tpu.trace_start"() <{level = 10 : i32, message = "bqk,bke->bqe"}> : () -> ()
    %cst_34 = arith.constant dense<0.000000e+00> : vector<2x8x8xf32>
    %73 = tpu.matmul %72, %57, %cst_34 {dimension_numbers = #tpu.dot_dimension_numbers<[2], [1], [1], [2], [0, 0, 0, 1, 1, 2], [0], [0]>} : vector<2x8x8xf32>, vector<2x8x8xf32>, vector<2x8x8xf32> -> vector<2x8x8xf32>
    "tpu.trace_stop"() : () -> ()
    %74 = vector.extract_strided_slice %35 {offsets = [0, 0, 16], sizes = [2, 8, 8], strides = [1, 1, 1]} : vector<2x8x96xf32> to vector<2x8x8xf32>
    %75 = vector.extract_strided_slice %35 {offsets = [0, 0, 48], sizes = [2, 8, 8], strides = [1, 1, 1]} : vector<2x8x96xf32> to vector<2x8x8xf32>
    %76 = vector.extract_strided_slice %35 {offsets = [0, 0, 80], sizes = [2, 8, 8], strides = [1, 1, 1]} : vector<2x8x96xf32> to vector<2x8x8xf32>
    "tpu.trace_start"() <{level = 10 : i32, message = "bqe,bke->bqk"}> : () -> ()
    %cst_35 = arith.constant dense<0.000000e+00> : vector<2x8x8xf32>
    %77 = tpu.matmul %74, %75, %cst_35 {dimension_numbers = #tpu.dot_dimension_numbers<[2], [2], [1], [1], [0, 0, 0, 1, 1, 1], [0], [0]>} : vector<2x8x8xf32>, vector<2x8x8xf32>, vector<2x8x8xf32> -> vector<2x8x8xf32>
    "tpu.trace_stop"() : () -> ()
    %cst_36 = arith.constant 0.353553385 : f32
    %78 = vector.broadcast %cst_36 : f32 to vector<2x8x8xf32>
    %79 = arith.mulf %77, %78 : vector<2x8x8xf32>
    %cst_37 = arith.constant -1.000000e+09 : f32
    %80 = vector.broadcast %cst_37 : f32 to vector<2x8x8xf32>
    %81 = arith.select %4, %79, %80 : vector<2x8x8xi1>, vector<2x8x8xf32>
    %cst_38 = arith.constant dense<0xFF800000> : vector<2x8xf32>
    %82 = vector.multi_reduction <maximumf>, %81, %cst_38 [2] : vector<2x8x8xf32> to vector<2x8xf32>
    %83 = vector.shape_cast %82 : vector<2x8xf32> to vector<2x8x1xf32>
    %84 = vector.broadcast %83 : vector<2x8x1xf32> to vector<2x8x8xf32>
    %85 = arith.subf %81, %84 : vector<2x8x8xf32>
    %86 = math.exp %85 : vector<2x8x8xf32>
    %cst_39 = arith.constant dense<0.000000e+00> : vector<2x8xf32>
    %87 = vector.multi_reduction <add>, %86, %cst_39 [2] : vector<2x8x8xf32> to vector<2x8xf32>
    %88 = vector.shape_cast %87 : vector<2x8xf32> to vector<2x8x1xf32>
    %89 = tpu.reciprocal %88 {approx = true} : vector<2x8x1xf32> -> vector<2x8x1xf32>
    %90 = vector.broadcast %89 : vector<2x8x1xf32> to vector<2x8x8xf32>
    %91 = arith.mulf %86, %90 : vector<2x8x8xf32>
    "tpu.trace_start"() <{level = 10 : i32, message = "bqk,bke->bqe"}> : () -> ()
    %cst_40 = arith.constant dense<0.000000e+00> : vector<2x8x8xf32>
    %92 = tpu.matmul %91, %76, %cst_40 {dimension_numbers = #tpu.dot_dimension_numbers<[2], [1], [1], [2], [0, 0, 0, 1, 1, 2], [0], [0]>} : vector<2x8x8xf32>, vector<2x8x8xf32>, vector<2x8x8xf32> -> vector<2x8x8xf32>
    "tpu.trace_stop"() : () -> ()
    %93 = vector.extract_strided_slice %35 {offsets = [0, 0, 24], sizes = [2, 8, 8], strides = [1, 1, 1]} : vector<2x8x96xf32> to vector<2x8x8xf32>
    %94 = vector.extract_strided_slice %35 {offsets = [0, 0, 56], sizes = [2, 8, 8], strides = [1, 1, 1]} : vector<2x8x96xf32> to vector<2x8x8xf32>
    %95 = vector.extract_strided_slice %35 {offsets = [0, 0, 88], sizes = [2, 8, 8], strides = [1, 1, 1]} : vector<2x8x96xf32> to vector<2x8x8xf32>
    "tpu.trace_start"() <{level = 10 : i32, message = "bqe,bke->bqk"}> : () -> ()
    %cst_41 = arith.constant dense<0.000000e+00> : vector<2x8x8xf32>
    %96 = tpu.matmul %93, %94, %cst_41 {dimension_numbers = #tpu.dot_dimension_numbers<[2], [2], [1], [1], [0, 0, 0, 1, 1, 1], [0], [0]>} : vector<2x8x8xf32>, vector<2x8x8xf32>, vector<2x8x8xf32> -> vector<2x8x8xf32>
    "tpu.trace_stop"() : () -> ()
    %cst_42 = arith.constant 0.353553385 : f32
    %97 = vector.broadcast %cst_42 : f32 to vector<2x8x8xf32>
    %98 = arith.mulf %96, %97 : vector<2x8x8xf32>
    %cst_43 = arith.constant -1.000000e+09 : f32
    %99 = vector.broadcast %cst_43 : f32 to vector<2x8x8xf32>
    %100 = arith.select %4, %98, %99 : vector<2x8x8xi1>, vector<2x8x8xf32>
    %cst_44 = arith.constant dense<0xFF800000> : vector<2x8xf32>
    %101 = vector.multi_reduction <maximumf>, %100, %cst_44 [2] : vector<2x8x8xf32> to vector<2x8xf32>
    %102 = vector.shape_cast %101 : vector<2x8xf32> to vector<2x8x1xf32>
    %103 = vector.broadcast %102 : vector<2x8x1xf32> to vector<2x8x8xf32>
    %104 = arith.subf %100, %103 : vector<2x8x8xf32>
    %105 = math.exp %104 : vector<2x8x8xf32>
    %cst_45 = arith.constant dense<0.000000e+00> : vector<2x8xf32>
    %106 = vector.multi_reduction <add>, %105, %cst_45 [2] : vector<2x8x8xf32> to vector<2x8xf32>
    %107 = vector.shape_cast %106 : vector<2x8xf32> to vector<2x8x1xf32>
    %108 = tpu.reciprocal %107 {approx = true} : vector<2x8x1xf32> -> vector<2x8x1xf32>
    %109 = vector.broadcast %108 : vector<2x8x1xf32> to vector<2x8x8xf32>
    %110 = arith.mulf %105, %109 : vector<2x8x8xf32>
    "tpu.trace_start"() <{level = 10 : i32, message = "bqk,bke->bqe"}> : () -> ()
    %cst_46 = arith.constant dense<0.000000e+00> : vector<2x8x8xf32>
    %111 = tpu.matmul %110, %95, %cst_46 {dimension_numbers = #tpu.dot_dimension_numbers<[2], [1], [1], [2], [0, 0, 0, 1, 1, 2], [0], [0]>} : vector<2x8x8xf32>, vector<2x8x8xf32>, vector<2x8x8xf32> -> vector<2x8x8xf32>
    "tpu.trace_stop"() : () -> ()
    %112 = tpu.concatenate %54, %73, %92, %111 in 2 : vector<2x8x8xf32>, vector<2x8x8xf32>, vector<2x8x8xf32>, vector<2x8x8xf32> -> vector<2x8x32xf32>
    %113 = vector.shape_cast %112 : vector<2x8x32xf32> to vector<16x32xf32>
    %c0_47 = arith.constant 0 : index
    %c96 = arith.constant 96 : index
    %114 = vector.load %arg4[%c0_47, %c96] : memref<32x320xf32, #tpu.memory_space<vmem>>, vector<32x32xf32>
    %cst_48 = arith.constant dense<0.000000e+00> : vector<16x32xf32>
    %115 = tpu.matmul %113, %114, %cst_48 {dimension_numbers = #tpu.dot_dimension_numbers<[1], [0], [0], [1], [0, 0, 1, 1], [], []>} : vector<16x32xf32>, vector<32x32xf32>, vector<16x32xf32> -> vector<16x32xf32>
    %116 = arith.addf %0, %115 : vector<16x32xf32>
    %c0_49 = arith.constant 0 : index
    %c96_50 = arith.constant 96 : index
    %117 = vector.load %arg6[%c0_49, %c96_50] : memref<1x352xf32, #tpu.memory_space<vmem>>, vector<1x32xf32>
    %118 = vector.broadcast %117 : vector<1x32xf32> to vector<16x32xf32>
    %119 = arith.addf %116, %118 : vector<16x32xf32>
    %c1 = arith.constant 1 : index
    %c0_51 = arith.constant 0 : index
    %120 = vector.load %arg7[%c1, %c0_51] : memref<6x32xf32, #tpu.memory_space<vmem>>, vector<1x32xf32>
    %c4 = arith.constant 4 : index
    %c0_52 = arith.constant 0 : index
    %121 = vector.load %arg7[%c4, %c0_52] : memref<6x32xf32, #tpu.memory_space<vmem>>, vector<1x32xf32>
    %cst_53 = arith.constant dense<0.000000e+00> : vector<16xf32>
    %122 = vector.multi_reduction <add>, %119, %cst_53 [1] : vector<16x32xf32> to vector<16xf32>
    %123 = vector.shape_cast %122 : vector<16xf32> to vector<16x1xf32>
    %cst_54 = arith.constant 3.200000e+01 : f32
    %124 = vector.broadcast %cst_54 : f32 to vector<16x1xf32>
    %125 = arith.divf %123, %124 : vector<16x1xf32>
    %126 = vector.broadcast %125 : vector<16x1xf32> to vector<16x32xf32>
    %127 = arith.subf %119, %126 : vector<16x32xf32>
    %128 = arith.mulf %127, %127 : vector<16x32xf32>
    %cst_55 = arith.constant dense<0.000000e+00> : vector<16xf32>
    %129 = vector.multi_reduction <add>, %128, %cst_55 [1] : vector<16x32xf32> to vector<16xf32>
    %130 = vector.shape_cast %129 : vector<16xf32> to vector<16x1xf32>
    %cst_56 = arith.constant 0.0322580636 : f32
    %131 = vector.broadcast %cst_56 : f32 to vector<16x1xf32>
    %132 = arith.mulf %130, %131 : vector<16x1xf32>
    %133 = vector.broadcast %120 : vector<1x32xf32> to vector<16x32xf32>
    %134 = arith.mulf %133, %127 : vector<16x32xf32>
    %135 = math.sqrt %132 : vector<16x1xf32>
    %cst_57 = arith.constant 9.99999997E-7 : f32
    %136 = vector.broadcast %cst_57 : f32 to vector<16x1xf32>
    %137 = arith.addf %135, %136 : vector<16x1xf32>
    %138 = vector.broadcast %137 : vector<16x1xf32> to vector<16x32xf32>
    %139 = arith.divf %134, %138 : vector<16x32xf32>
    %140 = vector.broadcast %121 : vector<1x32xf32> to vector<16x32xf32>
    %141 = arith.addf %139, %140 : vector<16x32xf32>
    %c0_58 = arith.constant 0 : index
    %c128 = arith.constant 128 : index
    %142 = vector.load %arg4[%c0_58, %c128] : memref<32x320xf32, #tpu.memory_space<vmem>>, vector<32x32xf32>
    %cst_59 = arith.constant dense<0.000000e+00> : vector<16x32xf32>
    %143 = tpu.matmul %141, %142, %cst_59 {dimension_numbers = #tpu.dot_dimension_numbers<[1], [0], [0], [1], [0, 0, 1, 1], [], []>} : vector<16x32xf32>, vector<32x32xf32>, vector<16x32xf32> -> vector<16x32xf32>
    %c0_60 = arith.constant 0 : index
    %c128_61 = arith.constant 128 : index
    %144 = vector.load %arg6[%c0_60, %c128_61] : memref<1x352xf32, #tpu.memory_space<vmem>>, vector<1x32xf32>
    %145 = vector.broadcast %144 : vector<1x32xf32> to vector<16x32xf32>
    %146 = arith.addf %143, %145 : vector<16x32xf32>
    %c0_62 = arith.constant 0 : index
    %c160 = arith.constant 160 : index
    %147 = vector.load %arg4[%c0_62, %c160] : memref<32x320xf32, #tpu.memory_space<vmem>>, vector<32x64xf32>
    %cst_63 = arith.constant dense<0.000000e+00> : vector<16x64xf32>
    %148 = tpu.matmul %1, %147, %cst_63 {dimension_numbers = #tpu.dot_dimension_numbers<[1], [0], [0], [1], [0, 0, 1, 1], [], []>} : vector<16x32xf32>, vector<32x64xf32>, vector<16x64xf32> -> vector<16x64xf32>
    %c0_64 = arith.constant 0 : index
    %c160_65 = arith.constant 160 : index
    %149 = vector.load %arg6[%c0_64, %c160_65] : memref<1x352xf32, #tpu.memory_space<vmem>>, vector<1x64xf32>
    %150 = vector.broadcast %149 : vector<1x64xf32> to vector<16x64xf32>
    %151 = arith.addf %148, %150 : vector<16x64xf32>
    %152 = vector.shape_cast %146 : vector<16x32xf32> to vector<2x8x32xf32>
    %153 = vector.shape_cast %151 : vector<16x64xf32> to vector<2x8x64xf32>
    %154 = vector.extract_strided_slice %152 {offsets = [0, 0, 0], sizes = [2, 8, 8], strides = [1, 1, 1]} : vector<2x8x32xf32> to vector<2x8x8xf32>
    %155 = vector.extract_strided_slice %153 {offsets = [0, 0, 0], sizes = [2, 8, 8], strides = [1, 1, 1]} : vector<2x8x64xf32> to vector<2x8x8xf32>
    %156 = vector.extract_strided_slice %153 {offsets = [0, 0, 32], sizes = [2, 8, 8], strides = [1, 1, 1]} : vector<2x8x64xf32> to vector<2x8x8xf32>
    "tpu.trace_start"() <{level = 10 : i32, message = "bqe,bke->bqk"}> : () -> ()
    %cst_66 = arith.constant dense<0.000000e+00> : vector<2x8x8xf32>
    %157 = tpu.matmul %154, %155, %cst_66 {dimension_numbers = #tpu.dot_dimension_numbers<[2], [2], [1], [1], [0, 0, 0, 1, 1, 1], [0], [0]>} : vector<2x8x8xf32>, vector<2x8x8xf32>, vector<2x8x8xf32> -> vector<2x8x8xf32>
    "tpu.trace_stop"() : () -> ()
    %cst_67 = arith.constant 0.353553385 : f32
    %158 = vector.broadcast %cst_67 : f32 to vector<2x8x8xf32>
    %159 = arith.mulf %157, %158 : vector<2x8x8xf32>
    %cst_68 = arith.constant -1.000000e+09 : f32
    %160 = vector.shape_cast %7 : vector<2x1x8xi1> to vector<2x1x8xi1>
    %161 = vector.broadcast %160 : vector<2x1x8xi1> to vector<2x8x8xi1>
    %162 = vector.broadcast %cst_68 : f32 to vector<2x8x8xf32>
    %163 = arith.select %161, %159, %162 : vector<2x8x8xi1>, vector<2x8x8xf32>
    %cst_69 = arith.constant dense<0xFF800000> : vector<2x8xf32>
    %164 = vector.multi_reduction <maximumf>, %163, %cst_69 [2] : vector<2x8x8xf32> to vector<2x8xf32>
    %165 = vector.shape_cast %164 : vector<2x8xf32> to vector<2x8x1xf32>
    %166 = vector.broadcast %165 : vector<2x8x1xf32> to vector<2x8x8xf32>
    %167 = arith.subf %163, %166 : vector<2x8x8xf32>
    %168 = math.exp %167 : vector<2x8x8xf32>
    %cst_70 = arith.constant dense<0.000000e+00> : vector<2x8xf32>
    %169 = vector.multi_reduction <add>, %168, %cst_70 [2] : vector<2x8x8xf32> to vector<2x8xf32>
    %170 = vector.shape_cast %169 : vector<2x8xf32> to vector<2x8x1xf32>
    %171 = tpu.reciprocal %170 {approx = true} : vector<2x8x1xf32> -> vector<2x8x1xf32>
    %172 = vector.broadcast %171 : vector<2x8x1xf32> to vector<2x8x8xf32>
    %173 = arith.mulf %168, %172 : vector<2x8x8xf32>
    "tpu.trace_start"() <{level = 10 : i32, message = "bqk,bke->bqe"}> : () -> ()
    %cst_71 = arith.constant dense<0.000000e+00> : vector<2x8x8xf32>
    %174 = tpu.matmul %173, %156, %cst_71 {dimension_numbers = #tpu.dot_dimension_numbers<[2], [1], [1], [2], [0, 0, 0, 1, 1, 2], [0], [0]>} : vector<2x8x8xf32>, vector<2x8x8xf32>, vector<2x8x8xf32> -> vector<2x8x8xf32>
    "tpu.trace_stop"() : () -> ()
    %175 = vector.extract_strided_slice %152 {offsets = [0, 0, 8], sizes = [2, 8, 8], strides = [1, 1, 1]} : vector<2x8x32xf32> to vector<2x8x8xf32>
    %176 = vector.extract_strided_slice %153 {offsets = [0, 0, 8], sizes = [2, 8, 8], strides = [1, 1, 1]} : vector<2x8x64xf32> to vector<2x8x8xf32>
    %177 = vector.extract_strided_slice %153 {offsets = [0, 0, 40], sizes = [2, 8, 8], strides = [1, 1, 1]} : vector<2x8x64xf32> to vector<2x8x8xf32>
    "tpu.trace_start"() <{level = 10 : i32, message = "bqe,bke->bqk"}> : () -> ()
    %cst_72 = arith.constant dense<0.000000e+00> : vector<2x8x8xf32>
    %178 = tpu.matmul %175, %176, %cst_72 {dimension_numbers = #tpu.dot_dimension_numbers<[2], [2], [1], [1], [0, 0, 0, 1, 1, 1], [0], [0]>} : vector<2x8x8xf32>, vector<2x8x8xf32>, vector<2x8x8xf32> -> vector<2x8x8xf32>
    "tpu.trace_stop"() : () -> ()
    %cst_73 = arith.constant 0.353553385 : f32
    %179 = vector.broadcast %cst_73 : f32 to vector<2x8x8xf32>
    %180 = arith.mulf %178, %179 : vector<2x8x8xf32>
    %cst_74 = arith.constant -1.000000e+09 : f32
    %181 = vector.shape_cast %7 : vector<2x1x8xi1> to vector<2x1x8xi1>
    %182 = vector.broadcast %181 : vector<2x1x8xi1> to vector<2x8x8xi1>
    %183 = vector.broadcast %cst_74 : f32 to vector<2x8x8xf32>
    %184 = arith.select %182, %180, %183 : vector<2x8x8xi1>, vector<2x8x8xf32>
    %cst_75 = arith.constant dense<0xFF800000> : vector<2x8xf32>
    %185 = vector.multi_reduction <maximumf>, %184, %cst_75 [2] : vector<2x8x8xf32> to vector<2x8xf32>
    %186 = vector.shape_cast %185 : vector<2x8xf32> to vector<2x8x1xf32>
    %187 = vector.broadcast %186 : vector<2x8x1xf32> to vector<2x8x8xf32>
    %188 = arith.subf %184, %187 : vector<2x8x8xf32>
    %189 = math.exp %188 : vector<2x8x8xf32>
    %cst_76 = arith.constant dense<0.000000e+00> : vector<2x8xf32>
    %190 = vector.multi_reduction <add>, %189, %cst_76 [2] : vector<2x8x8xf32> to vector<2x8xf32>
    %191 = vector.shape_cast %190 : vector<2x8xf32> to vector<2x8x1xf32>
    %192 = tpu.reciprocal %191 {approx = true} : vector<2x8x1xf32> -> vector<2x8x1xf32>
    %193 = vector.broadcast %192 : vector<2x8x1xf32> to vector<2x8x8xf32>
    %194 = arith.mulf %189, %193 : vector<2x8x8xf32>
    "tpu.trace_start"() <{level = 10 : i32, message = "bqk,bke->bqe"}> : () -> ()
    %cst_77 = arith.constant dense<0.000000e+00> : vector<2x8x8xf32>
    %195 = tpu.matmul %194, %177, %cst_77 {dimension_numbers = #tpu.dot_dimension_numbers<[2], [1], [1], [2], [0, 0, 0, 1, 1, 2], [0], [0]>} : vector<2x8x8xf32>, vector<2x8x8xf32>, vector<2x8x8xf32> -> vector<2x8x8xf32>
    "tpu.trace_stop"() : () -> ()
    %196 = vector.extract_strided_slice %152 {offsets = [0, 0, 16], sizes = [2, 8, 8], strides = [1, 1, 1]} : vector<2x8x32xf32> to vector<2x8x8xf32>
    %197 = vector.extract_strided_slice %153 {offsets = [0, 0, 16], sizes = [2, 8, 8], strides = [1, 1, 1]} : vector<2x8x64xf32> to vector<2x8x8xf32>
    %198 = vector.extract_strided_slice %153 {offsets = [0, 0, 48], sizes = [2, 8, 8], strides = [1, 1, 1]} : vector<2x8x64xf32> to vector<2x8x8xf32>
    "tpu.trace_start"() <{level = 10 : i32, message = "bqe,bke->bqk"}> : () -> ()
    %cst_78 = arith.constant dense<0.000000e+00> : vector<2x8x8xf32>
    %199 = tpu.matmul %196, %197, %cst_78 {dimension_numbers = #tpu.dot_dimension_numbers<[2], [2], [1], [1], [0, 0, 0, 1, 1, 1], [0], [0]>} : vector<2x8x8xf32>, vector<2x8x8xf32>, vector<2x8x8xf32> -> vector<2x8x8xf32>
    "tpu.trace_stop"() : () -> ()
    %cst_79 = arith.constant 0.353553385 : f32
    %200 = vector.broadcast %cst_79 : f32 to vector<2x8x8xf32>
    %201 = arith.mulf %199, %200 : vector<2x8x8xf32>
    %cst_80 = arith.constant -1.000000e+09 : f32
    %202 = vector.shape_cast %7 : vector<2x1x8xi1> to vector<2x1x8xi1>
    %203 = vector.broadcast %202 : vector<2x1x8xi1> to vector<2x8x8xi1>
    %204 = vector.broadcast %cst_80 : f32 to vector<2x8x8xf32>
    %205 = arith.select %203, %201, %204 : vector<2x8x8xi1>, vector<2x8x8xf32>
    %cst_81 = arith.constant dense<0xFF800000> : vector<2x8xf32>
    %206 = vector.multi_reduction <maximumf>, %205, %cst_81 [2] : vector<2x8x8xf32> to vector<2x8xf32>
    %207 = vector.shape_cast %206 : vector<2x8xf32> to vector<2x8x1xf32>
    %208 = vector.broadcast %207 : vector<2x8x1xf32> to vector<2x8x8xf32>
    %209 = arith.subf %205, %208 : vector<2x8x8xf32>
    %210 = math.exp %209 : vector<2x8x8xf32>
    %cst_82 = arith.constant dense<0.000000e+00> : vector<2x8xf32>
    %211 = vector.multi_reduction <add>, %210, %cst_82 [2] : vector<2x8x8xf32> to vector<2x8xf32>
    %212 = vector.shape_cast %211 : vector<2x8xf32> to vector<2x8x1xf32>
    %213 = tpu.reciprocal %212 {approx = true} : vector<2x8x1xf32> -> vector<2x8x1xf32>
    %214 = vector.broadcast %213 : vector<2x8x1xf32> to vector<2x8x8xf32>
    %215 = arith.mulf %210, %214 : vector<2x8x8xf32>
    "tpu.trace_start"() <{level = 10 : i32, message = "bqk,bke->bqe"}> : () -> ()
    %cst_83 = arith.constant dense<0.000000e+00> : vector<2x8x8xf32>
    %216 = tpu.matmul %215, %198, %cst_83 {dimension_numbers = #tpu.dot_dimension_numbers<[2], [1], [1], [2], [0, 0, 0, 1, 1, 2], [0], [0]>} : vector<2x8x8xf32>, vector<2x8x8xf32>, vector<2x8x8xf32> -> vector<2x8x8xf32>
    "tpu.trace_stop"() : () -> ()
    %217 = vector.extract_strided_slice %152 {offsets = [0, 0, 24], sizes = [2, 8, 8], strides = [1, 1, 1]} : vector<2x8x32xf32> to vector<2x8x8xf32>
    %218 = vector.extract_strided_slice %153 {offsets = [0, 0, 24], sizes = [2, 8, 8], strides = [1, 1, 1]} : vector<2x8x64xf32> to vector<2x8x8xf32>
    %219 = vector.extract_strided_slice %153 {offsets = [0, 0, 56], sizes = [2, 8, 8], strides = [1, 1, 1]} : vector<2x8x64xf32> to vector<2x8x8xf32>
    "tpu.trace_start"() <{level = 10 : i32, message = "bqe,bke->bqk"}> : () -> ()
    %cst_84 = arith.constant dense<0.000000e+00> : vector<2x8x8xf32>
    %220 = tpu.matmul %217, %218, %cst_84 {dimension_numbers = #tpu.dot_dimension_numbers<[2], [2], [1], [1], [0, 0, 0, 1, 1, 1], [0], [0]>} : vector<2x8x8xf32>, vector<2x8x8xf32>, vector<2x8x8xf32> -> vector<2x8x8xf32>
    "tpu.trace_stop"() : () -> ()
    %cst_85 = arith.constant 0.353553385 : f32
    %221 = vector.broadcast %cst_85 : f32 to vector<2x8x8xf32>
    %222 = arith.mulf %220, %221 : vector<2x8x8xf32>
    %cst_86 = arith.constant -1.000000e+09 : f32
    %223 = vector.shape_cast %7 : vector<2x1x8xi1> to vector<2x1x8xi1>
    %224 = vector.broadcast %223 : vector<2x1x8xi1> to vector<2x8x8xi1>
    %225 = vector.broadcast %cst_86 : f32 to vector<2x8x8xf32>
    %226 = arith.select %224, %222, %225 : vector<2x8x8xi1>, vector<2x8x8xf32>
    %cst_87 = arith.constant dense<0xFF800000> : vector<2x8xf32>
    %227 = vector.multi_reduction <maximumf>, %226, %cst_87 [2] : vector<2x8x8xf32> to vector<2x8xf32>
    %228 = vector.shape_cast %227 : vector<2x8xf32> to vector<2x8x1xf32>
    %229 = vector.broadcast %228 : vector<2x8x1xf32> to vector<2x8x8xf32>
    %230 = arith.subf %226, %229 : vector<2x8x8xf32>
    %231 = math.exp %230 : vector<2x8x8xf32>
    %cst_88 = arith.constant dense<0.000000e+00> : vector<2x8xf32>
    %232 = vector.multi_reduction <add>, %231, %cst_88 [2] : vector<2x8x8xf32> to vector<2x8xf32>
    %233 = vector.shape_cast %232 : vector<2x8xf32> to vector<2x8x1xf32>
    %234 = tpu.reciprocal %233 {approx = true} : vector<2x8x1xf32> -> vector<2x8x1xf32>
    %235 = vector.broadcast %234 : vector<2x8x1xf32> to vector<2x8x8xf32>
    %236 = arith.mulf %231, %235 : vector<2x8x8xf32>
    "tpu.trace_start"() <{level = 10 : i32, message = "bqk,bke->bqe"}> : () -> ()
    %cst_89 = arith.constant dense<0.000000e+00> : vector<2x8x8xf32>
    %237 = tpu.matmul %236, %219, %cst_89 {dimension_numbers = #tpu.dot_dimension_numbers<[2], [1], [1], [2], [0, 0, 0, 1, 1, 2], [0], [0]>} : vector<2x8x8xf32>, vector<2x8x8xf32>, vector<2x8x8xf32> -> vector<2x8x8xf32>
    "tpu.trace_stop"() : () -> ()
    %238 = tpu.concatenate %174, %195, %216, %237 in 2 : vector<2x8x8xf32>, vector<2x8x8xf32>, vector<2x8x8xf32>, vector<2x8x8xf32> -> vector<2x8x32xf32>
    %239 = vector.shape_cast %238 : vector<2x8x32xf32> to vector<16x32xf32>
    %c0_90 = arith.constant 0 : index
    %c224 = arith.constant 224 : index
    %240 = vector.load %arg4[%c0_90, %c224] : memref<32x320xf32, #tpu.memory_space<vmem>>, vector<32x32xf32>
    %cst_91 = arith.constant dense<0.000000e+00> : vector<16x32xf32>
    %241 = tpu.matmul %239, %240, %cst_91 {dimension_numbers = #tpu.dot_dimension_numbers<[1], [0], [0], [1], [0, 0, 1, 1], [], []>} : vector<16x32xf32>, vector<32x32xf32>, vector<16x32xf32> -> vector<16x32xf32>
    %242 = arith.addf %119, %241 : vector<16x32xf32>
    %c0_92 = arith.constant 0 : index
    %c224_93 = arith.constant 224 : index
    %243 = vector.load %arg6[%c0_92, %c224_93] : memref<1x352xf32, #tpu.memory_space<vmem>>, vector<1x32xf32>
    %244 = vector.broadcast %243 : vector<1x32xf32> to vector<16x32xf32>
    %245 = arith.addf %242, %244 : vector<16x32xf32>
    %c2 = arith.constant 2 : index
    %c0_94 = arith.constant 0 : index
    %246 = vector.load %arg7[%c2, %c0_94] : memref<6x32xf32, #tpu.memory_space<vmem>>, vector<1x32xf32>
    %c5 = arith.constant 5 : index
    %c0_95 = arith.constant 0 : index
    %247 = vector.load %arg7[%c5, %c0_95] : memref<6x32xf32, #tpu.memory_space<vmem>>, vector<1x32xf32>
    %cst_96 = arith.constant dense<0.000000e+00> : vector<16xf32>
    %248 = vector.multi_reduction <add>, %245, %cst_96 [1] : vector<16x32xf32> to vector<16xf32>
    %249 = vector.shape_cast %248 : vector<16xf32> to vector<16x1xf32>
    %cst_97 = arith.constant 3.200000e+01 : f32
    %250 = vector.broadcast %cst_97 : f32 to vector<16x1xf32>
    %251 = arith.divf %249, %250 : vector<16x1xf32>
    %252 = vector.broadcast %251 : vector<16x1xf32> to vector<16x32xf32>
    %253 = arith.subf %245, %252 : vector<16x32xf32>
    %254 = arith.mulf %253, %253 : vector<16x32xf32>
    %cst_98 = arith.constant dense<0.000000e+00> : vector<16xf32>
    %255 = vector.multi_reduction <add>, %254, %cst_98 [1] : vector<16x32xf32> to vector<16xf32>
    %256 = vector.shape_cast %255 : vector<16xf32> to vector<16x1xf32>
    %cst_99 = arith.constant 0.0322580636 : f32
    %257 = vector.broadcast %cst_99 : f32 to vector<16x1xf32>
    %258 = arith.mulf %256, %257 : vector<16x1xf32>
    %259 = vector.broadcast %246 : vector<1x32xf32> to vector<16x32xf32>
    %260 = arith.mulf %259, %253 : vector<16x32xf32>
    %261 = math.sqrt %258 : vector<16x1xf32>
    %cst_100 = arith.constant 9.99999997E-7 : f32
    %262 = vector.broadcast %cst_100 : f32 to vector<16x1xf32>
    %263 = arith.addf %261, %262 : vector<16x1xf32>
    %264 = vector.broadcast %263 : vector<16x1xf32> to vector<16x32xf32>
    %265 = arith.divf %260, %264 : vector<16x32xf32>
    %266 = vector.broadcast %247 : vector<1x32xf32> to vector<16x32xf32>
    %267 = arith.addf %265, %266 : vector<16x32xf32>
    %c0_101 = arith.constant 0 : index
    %c256 = arith.constant 256 : index
    %268 = vector.load %arg4[%c0_101, %c256] : memref<32x320xf32, #tpu.memory_space<vmem>>, vector<32x64xf32>
    %cst_102 = arith.constant dense<0.000000e+00> : vector<16x64xf32>
    %269 = tpu.matmul %267, %268, %cst_102 {dimension_numbers = #tpu.dot_dimension_numbers<[1], [0], [0], [1], [0, 0, 1, 1], [], []>} : vector<16x32xf32>, vector<32x64xf32>, vector<16x64xf32> -> vector<16x64xf32>
    %c0_103 = arith.constant 0 : index
    %c256_104 = arith.constant 256 : index
    %270 = vector.load %arg6[%c0_103, %c256_104] : memref<1x352xf32, #tpu.memory_space<vmem>>, vector<1x64xf32>
    %271 = vector.broadcast %270 : vector<1x64xf32> to vector<16x64xf32>
    %272 = arith.addf %269, %271 : vector<16x64xf32>
    %cst_105 = arith.constant 0.000000e+00 : f32
    %273 = vector.broadcast %cst_105 : f32 to vector<16x64xf32>
    %274 = arith.maximumf %272, %273 : vector<16x64xf32>
    %c0_106 = arith.constant 0 : index
    %c0_107 = arith.constant 0 : index
    %275 = vector.load %arg5[%c0_106, %c0_107] : memref<64x32xf32, #tpu.memory_space<vmem>>, vector<64x32xf32>
    %cst_108 = arith.constant dense<0.000000e+00> : vector<16x32xf32>
    %276 = tpu.matmul %274, %275, %cst_108 {dimension_numbers = #tpu.dot_dimension_numbers<[1], [0], [0], [1], [0, 0, 1, 1], [], []>} : vector<16x64xf32>, vector<64x32xf32>, vector<16x32xf32> -> vector<16x32xf32>
    %277 = arith.addf %245, %276 : vector<16x32xf32>
    %c0_109 = arith.constant 0 : index
    %c320 = arith.constant 320 : index
    %278 = vector.load %arg6[%c0_109, %c320] : memref<1x352xf32, #tpu.memory_space<vmem>>, vector<1x32xf32>
    %279 = vector.broadcast %278 : vector<1x32xf32> to vector<16x32xf32>
    %280 = arith.addf %277, %279 : vector<16x32xf32>
    %c0_110 = arith.constant 0 : index
    %c0_111 = arith.constant 0 : index
    %281 = vector.load %arg8[%c0_110, %c0_111] : memref<16x32xf32, #tpu.memory_space<vmem>>, vector<16x32xf32>
    tpu.vector_store %arg8[%c0_110, %c0_111], %280 {strides = array<i32>} : memref<16x32xf32, #tpu.memory_space<vmem>>, vector<16x32xf32>,
    return
  }
}

</mosaic_0001>

<bundles_post_ra>
// kernel: decoder_layer.1
= control target key start
LH: loop header
LB: loop body
LE: loop exit
PB: predicated region body
PF: predicated region fallthrough
CT: control target
= control target key end

     0   :  { %vm44_vm0 = vcmask 261120   ;;  %s4986_s0 = inlined_call_operand.vmem [shape: f32[16,32], index: 0, kind: input, shape index: {}]   ;;  %s4987_s1 = inlined_call_operand.vmem [shape: f32[16,32], index: 1, kind: input, shape index: {}]   ;;  %s4988_s2 = inlined_call_operand.vmem [shape: f32[2,8,8], index: 2, kind: input, shape index: {}]   ;;  %s4989_s3 = inlined_call_operand.vmem [shape: f32[2,1,8], index: 3, kind: input, shape index: {}]   ;;  %s4990_s4 = inlined_call_operand.vmem [shape: f32[32,320], index: 4, kind: input, shape index: {}]   ;;  %s4991_s5 = inlined_call_operand.vmem [shape: f32[64,32], index: 5, kind: input, shape index: {}]   ;;  %s4992_s6 = inlined_call_operand.vmem [shape: f32[1,352], index: 6, kind: input, shape index: {}]   ;;  %s4993_s7 = inlined_call_operand.vmem [shape: f32[6,32], index: 7, kind: input, shape index: {}]   ;;  %s4994_s8 = inlined_call_operand.hbm [shape: f32[16,32], index: 8, kind: output, shape index: {}]  }
   0x1   :  { %v4390_v0 = vld [vmem:[%s4986_s0] sm:$0xff]  ;;  %v4395_v1 = vld [vmem:[%s4986_s0 + $0x8] sm:$0xff] }
   0x2   :  { %13 = vsyncpa [#allocation3], 0  ;;  %v45_v2 = vsel %vm44_vm0, %v4390_v0, 0.0  ;;  %v48_v3 = vsel %vm44_vm0, %v4395_v1, 0.0  ;;  %v4408_v14 = vld [vmem:[%s4990_s4] sm:$0xff]  ;;  %v4413_v15 = vld [vmem:[%s4990_s4 + $0x18] sm:$0xff] }
   0x3   :  { %46 = vadd.xlane.f32.xlu0 %v45_v2  ;;  %v4418_v16 = vld [vmem:[%s4990_s4 + $0x30] sm:$0xff]  ;;  %v4096_v17 = vpack.c.bf16 %v4413_v15, %v4408_v14  ;;  %v4425_v18 = vld [vmem:[%s4990_s4 + $0x48] sm:$0xff]  ;;  %v3668_v36 = vld [vmem:[%s4993_s7] ss:$0 sm:$0xff]  ;;  %v4322_v46 = vmov 0.0   ;;  %vm4323_vm5 = vmmov 0  }
   0x4   :  { %v4100_v19 = vpack.c.bf16 %v4425_v18, %v4418_v16  ;;  %v3669_v39 = vld [vmem:[%s4993_s7 + $0x3] ss:$0 sm:$0xff]  ;;  %3872 = vmatprep.subr.mxu0 %v4322_v46  ;;  %3874 = vmatprep.mubr.msk.f32.mxu0 %vm4323_vm5, %v4322_v46  ;;  %v4446_v47 = vld [vmem:[%s4992_s6] ss:$0 sm:$0xff]  ;;  %s4324_s22 = smov 96   ;;  %vm193_vm6 = vcmask 64512  }
   0x5   :  { %4097 = vmatprep.subr.bf16.mxu1 %v4096_v17  ;;  %v4473_v54 = vld [vmem:[%s4988_s2] sm:$0xff]  ;;  %v4479_v58 = vld [vmem:[%s4988_s2 + $0x8] sm:$0xff]  ;;  %s4325_s27 = smov 64   ;;  %s4326_s2 = smov 88   ;;  %vm1554_vm9 = vcmask 195584   ;;  %vm1551_vm10 = vcmask 130048  }
   0x6   :  { %4099 = vmatpush3.bf16.msra.mxu1 %v4096_v17  ;;  %vm36_vm7 = vcmp.ne.f32.partialorder %v4473_v54, 0.0  ;;  %vm37_vm8 = vcmp.ne.f32.partialorder %v4479_v58, 0.0  ;;  %s4327_s28 = smov 120   ;;  %s4328_s29 = smov 56   ;;  %v4185_v54 = vpack.i.bf16 %v4425_v18, %v4418_v16 }
   0x7   :  { %49 = vadd.xlane.f32.xlu0 %v48_v3  ;;  %4101 = vmatprep.subr.bf16.mxu1 %v4100_v19  ;;  %s4329_s30 = smov 80   ;;  %s4330_s0 = smov 112  }
   0x8   :  { %s4331_s9 = smov 48   ;;  %s4332_s10 = smov 72  }
   0x9   :  { %s4333_s11 = smov 104   ;;  %s4334_s12 = smov 40  }
   0xa   :  { %4103 = vmatpush3.bf16.msra.mxu1 %v4100_v19  ;;  %s4335_s13 = smov 32   ;;  %s4336_s14 = smov 8  }
   0xb   :  { %3862 = vmatprep.subr.mxu1 %v4322_v46  ;;  %s4337_s15 = smov 16   ;;  %s4338_s16 = smov 24  }
  0x90   :  { %v47_v4 = vpop.xlane.xlu0 %46 }
  0x91   :  { %v52_v5 = vmul.f32 0.03125, %v47_v4 }
  0x93   :  { %v54_v6 = vsub.f32 %v4390_v0, %v52_v5 }
  0x94   :  { %v50_v7 = vpop.xlane.xlu0 %49 }
  0x95   :  { %v53_v8 = vmul.f32 0.03125, %v50_v7  ;;  %v56_v9 = vmul.f32 %v54_v6, %v54_v6  ;;  %v70_v37 = vmul.f32 %v3668_v36, %v54_v6 }
  0x97   :  { %v55_v10 = vsub.f32 %v4395_v1, %v53_v8  ;;  %v58_v11 = vsel %vm44_vm0, %v56_v9, 0.0 }
  0x98   :  { %59 = vadd.xlane.f32.xlu1 %v58_v11 }
  0x99   :  { %v57_v12 = vmul.f32 %v55_v10, %v55_v10  ;;  %v71_v41 = vmul.f32 %v3668_v36, %v55_v10 }
  0x9b   :  { %v61_v13 = vsel %vm44_vm0, %v57_v12, 0.0 }
  0x9c   :  { %62 = vadd.xlane.f32.xlu1 %v61_v13 }
 0x125   :  { %v60_v20 = vpop.xlane.xlu1 %59 }
 0x126   :  { %v64_v21 = vmul.f32 0.032258064, %v60_v20 }
 0x128   :  { %4210 = vrsqrt.f32 %v64_v21  ;;  %vm74_vm1 = vcmp.eq.f32.partialorder %v64_v21, inf  ;;  %v77_v26 = vand.u32 2147483648, %v64_v21  ;;  %vm76_vm2 = vcmp.eq.f32.partialorder %v64_v21, 0.0 }
 0x129   :  { %v63_v22 = vpop.xlane.xlu1 %62 }
 0x12a   :  { %v65_v23 = vmul.f32 0.032258064, %v63_v22 }
 0x12c   :  { %4212 = vrsqrt.f32 %v65_v23  ;;  %vm81_vm3 = vcmp.eq.f32.partialorder %v65_v23, inf  ;;  %v84_v32 = vand.u32 2147483648, %v65_v23  ;;  %vm83_vm4 = vcmp.eq.f32.partialorder %v65_v23, 0.0 }
 0x132   :  { %v4211_v24 = vpop.eup %4210 }
 0x133   :  { %v73_v25 = vmul.f32 %v4211_v24, %v64_v21 }
 0x135   :  { %v75_v27 = vsel %vm74_vm1, %v64_v21, %v73_v25 }
 0x136   :  { %v4213_v28 = vpop.eup %4212  ;;  %v78_v29 = vsel %vm76_vm2, %v77_v26, %v75_v27 }
 0x137   :  { %v80_v30 = vmul.f32 %v4213_v28, %v65_v23  ;;  %v86_v31 = vadd.f32 1e-06, %v78_v29 }
 0x139   :  { %v82_v33 = vsel %vm81_vm3, %v65_v23, %v80_v30  ;;  %4214 = vrcp.f32 %v86_v31 }
 0x13a   :  { %v85_v34 = vsel %vm83_vm4, %v84_v32, %v82_v33 }
 0x13b   :  { %v87_v35 = vadd.f32 1e-06, %v85_v34 }
 0x13d   :  { %4216 = vrcp.f32 %v87_v35 }
 0x143   :  { %v4215_v38 = vpop.eup %4214 }
 0x144   :  { %v89_v40 = vmul.f32 %v4215_v38, %v70_v37 }
 0x146   :  { %v96_v42 = vadd.f32 %v3669_v39, %v89_v40 }
 0x147   :  { %v4217_v43 = vpop.eup %4216 }
 0x148   :  { %v91_v44 = vmul.f32 %v4217_v43, %v71_v41  ;;  %3859 = vmatprep.mubr.msk.f32.mxu1 %vm44_vm0, %v96_v42 }
 0x14a   :  { %v97_v45 = vadd.f32 %v3669_v39, %v91_v44 }
 0x14c   :  { %3860 = vmatmul.mubr.msk.f32.vlgmr.msra.gmra.mrb[0].mxu1 %vm44_vm0, %v97_v45 }
 0x14d   :  { %3864 = vmatprep.mubr.msk.f32.mxu1 %vm4323_vm5, %v4322_v46 }
 0x21f   :  { %v3861_v48 = vpop.f32.mrb[0].mxu1 }
 0x220   :  { %v4449_v49 = vadd.f32 %v3861_v48, %v4446_v47  ;;  %v181_v50 = vpop.f32.mrb[1].mxu1 }
 0x221   :  { %v4452_v51 = vadd.f32 %v4446_v47, %v181_v50 }
 0x222   :  { %269 = vrot.lane.b32.xlu1 %v4449_v49, %s4324_s22 }
 0x223   :  { %191 = vrot.lane.b32.xlu0 %v4452_v51, %s4324_s22 }
 0x294   :  { %v270_v53 = vpop.permute.xlu1 %269 }
 0x295   :  { %v192_v52 = vpop.permute.xlu0 %191 }
 0x296   :  { %3863 = vmatpush3.xpose.msk.msra.mxu1 %vm193_vm6, %v192_v52 }
 0x297   :  { %3867 = vmatprep.subr.mxu1 %v4322_v46 }
 0x299   :  { %3865 = vmatmul.mubr.msk.f32.vlgmr.msra.gmra.mrb[2].mxu1 %vm193_vm6, %v4452_v51 }
 0x29a   :  { %3868 = vmatpush3.xpose.msk.msra.mxu1 %vm193_vm6, %v270_v53  ;;  %3869 = vmatprep.mubr.msk.f32.mxu1 %vm4323_vm5, %v4322_v46 }
 0x29b   :  { %3877 = vmatprep.subr.mxu1 %v4322_v46 }
 0x29d   :  { %3870 = vmatmul.mubr.msk.f32.vlgmr.msra.gmra.mrb[4].mxu1 %vm193_vm6, %v4449_v49 }
 0x29e   :  { %3879 = vmatprep.mubr.msk.f32.mxu1 %vm4323_vm5, %v4322_v46 }
 0x36c   :  { %v264_v55 = vpop.f32.mrb[2].mxu1 }
 0x36d   :  { %v345_v56 = vmul.f32 0.35355338, %v264_v55  ;;  %v3866_v57 = vpop.f32.mrb[3].mxu1 }
 0x36f   :  { %v347_v59 = vsel %vm36_vm7, %v345_v56, -1e+09 }
 0x370   :  { %v341_v60 = vpop.f32.mrb[4].mxu1  ;;  %v349_v61 = vsel %vm193_vm6, %v347_v59, -inf }
 0x371   :  { %v346_v62 = vmul.f32 0.35355338, %v341_v60  ;;  %350 = vmax.xlane.f32.xlu1 %v349_v61  ;;  %v3871_v63 = vpop.f32.mrb[5].mxu1 }
 0x373   :  { %v348_v2 = vsel %vm37_vm8, %v346_v62, -1e+09 }
 0x374   :  { %v352_v3 = vsel %vm193_vm6, %v348_v2, -inf }
 0x375   :  { %353 = vmax.xlane.f32.xlu0 %v352_v3 }
 0x382   :  { %447 = vrot.lane.b32.xlu1 %v4449_v49, %s4325_s27 }
 0x386   :  { %525 = vrot.lane.b32.xlu1 %v4452_v51, %s4326_s2 }
 0x38a   :  { %603 = vrot.lane.b32.xlu1 %v4449_v49, %s4326_s2 }
 0x38b   :  { %371 = vrot.lane.b32.xlu0 %v4452_v51, %s4325_s27 }
 0x3fe   :  { %v351_v4 = vpop.xlane.xlu1 %350 }
 0x3ff   :  { %v355_v5 = vsub.f32 %v347_v59, %v351_v4 }
 0x401   :  { %v357_v6 = vmul.f32 1.442695, %v355_v5 }
 0x402   :  { %v448_v7 = vpop.permute.xlu1 %447  ;;  %v354_v8 = vpop.xlane.xlu0 %353 }
 0x403   :  { %4218 = vpow2.f32 %v357_v6  ;;  %v356_v9 = vsub.f32 %v348_v2, %v354_v8  ;;  %3878 = vmatpush3.msra.mxu1 %v448_v7 }
 0x404   :  { %3887 = vmatprep.subr.mxu1 %v4322_v46 }
 0x405   :  { %v359_v10 = vmul.f32 1.442695, %v356_v9 }
 0x406   :  { %v372_v11 = vpop.permute.xlu0 %371  ;;  %v526_v20 = vpop.permute.xlu1 %525 }
 0x407   :  { %4220 = vpow2.f32 %v359_v10  ;;  %3873 = vmatpush3.msra.mxu0 %v372_v11 }
 0x408   :  { %3882 = vmatprep.subr.mxu0 %v4322_v46 }
 0x40a   :  { %v604_v21 = vpop.permute.xlu1 %603 }
 0x40d   :  { %v4219_v12 = vpop.eup %4218 }
 0x40e   :  { %v361_v13 = vsel %vm193_vm6, %v4219_v12, 0.0 }
 0x40f   :  { %362 = vadd.xlane.f32.xlu0 %v361_v13 }
 0x411   :  { %v4221_v17 = vpop.eup %4220 }
 0x412   :  { %v364_v19 = vsel %vm193_vm6, %v4221_v17, 0.0 }
 0x413   :  { %365 = vadd.xlane.f32.xlu1 %v364_v19 }
 0x424   :  { %601 = vrot.lane.b32.xlu1 %v4449_v49, %s4327_s28 }
 0x425   :  { %523 = vrot.lane.b32.xlu0 %v4452_v51, %s4327_s28 }
 0x49c   :  { %v363_v22 = vpop.xlane.xlu0 %362 }
 0x49d   :  { %4222 = vrcp.f32 %v363_v22 }
 0x4a0   :  { %v366_v23 = vpop.xlane.xlu1 %365  ;;  %v524_v28 = vpop.permute.xlu0 %523 }
 0x4a1   :  { %4224 = vrcp.f32 %v366_v23 }
 0x4a4   :  { %v602_v29 = vpop.permute.xlu1 %601 }
 0x4a7   :  { %v4223_v24 = vpop.eup %4222 }
 0x4a8   :  { %v369_v25 = vmul.f32 %v4223_v24, %v4219_v12 }
 0x4aa   :  { %3875 = vmatmul.mubr.msk.f32.vlgmr.msra.gmra.mrb[0].mxu0 %vm193_vm6, %v369_v25 }
 0x4ab   :  { %v4225_v26 = vpop.eup %4224  ;;  %3883 = vmatpush3.xpose.msk.msra.mxu0 %vm193_vm6, %v526_v20  ;;  %3884 = vmatprep.mubr.msk.f32.mxu0 %vm4323_vm5, %v4322_v46 }
 0x4ac   :  { %v370_v27 = vmul.f32 %v4225_v26, %v4221_v17  ;;  %3892 = vmatprep.subr.mxu0 %v4322_v46 }
 0x4ae   :  { %3880 = vmatmul.mubr.msk.f32.vlgmr.msra.gmra.mrb[6].mxu1 %vm193_vm6, %v370_v27  ;;  %3885 = vmatmul.mubr.msk.f32.vlgmr.msra.gmra.mrb[2].mxu0 %vm193_vm6, %v524_v28 }
 0x4af   :  { %3888 = vmatpush3.xpose.msk.msra.mxu1 %vm193_vm6, %v604_v21  ;;  %3889 = vmatprep.mubr.msk.f32.mxu1 %vm4323_vm5, %v4322_v46 }
 0x4b0   :  { %3897 = vmatprep.subr.mxu1 %v4322_v46  ;;  %3894 = vmatprep.mubr.msk.f32.mxu0 %vm4323_vm5, %v4322_v46 }
 0x4b2   :  { %3890 = vmatmul.mubr.msk.f32.vlgmr.msra.gmra.mrb[8].mxu1 %vm193_vm6, %v602_v29 }
 0x4b3   :  { %3899 = vmatprep.mubr.msk.f32.mxu1 %vm4323_vm5, %v4322_v46 }
 0x57d   :  { %v4520_v30 = vpop.f32.mrb[0].mxu0 }
 0x57e   :  { %v3876_v31 = vpop.f32.mrb[1].mxu0 }
 0x581   :  { %v4522_v32 = vpop.f32.mrb[6].mxu1  ;;  %v597_v33 = vpop.f32.mrb[2].mxu0 }
 0x582   :  { %v679_v34 = vmul.f32 0.35355338, %v597_v33  ;;  %v3881_v35 = vpop.f32.mrb[7].mxu1  ;;  %v3886_v36 = vpop.f32.mrb[3].mxu0 }
 0x584   :  { %v681_v37 = vsel %vm36_vm7, %v679_v34, -1e+09 }
 0x585   :  { %v675_v38 = vpop.f32.mrb[8].mxu1  ;;  %v683_v39 = vsel %vm193_vm6, %v681_v37, -inf }
 0x586   :  { %v680_v40 = vmul.f32 0.35355338, %v675_v38  ;;  %684 = vmax.xlane.f32.xlu0 %v683_v39  ;;  %v3891_v41 = vpop.f32.mrb[9].mxu1 }
 0x588   :  { %v682_v42 = vsel %vm37_vm8, %v680_v40, -1e+09 }
 0x589   :  { %v686_v43 = vsel %vm193_vm6, %v682_v42, -inf }
 0x58a   :  { %687 = vmax.xlane.f32.xlu1 %v686_v43 }
 0x59b   :  { %781 = vrot.lane.b32.xlu1 %v4449_v49, %s4328_s29 }
 0x59c   :  { %705 = vrot.lane.b32.xlu0 %v4452_v51, %s4328_s29 }
 0x59f   :  { %859 = vrot.lane.b32.xlu1 %v4452_v51, %s4329_s30 }
 0x5a3   :  { %937 = vrot.lane.b32.xlu1 %v4449_v49, %s4329_s30 }
 0x5a7   :  { %935 = vrot.lane.b32.xlu1 %v4449_v49, %s4330_s0 }
 0x613   :  { %v685_v44 = vpop.xlane.xlu0 %684 }
 0x614   :  { %v689_v45 = vsub.f32 %v681_v37, %v685_v44 }
 0x616   :  { %v691_v48 = vmul.f32 1.442695, %v689_v45 }
 0x617   :  { %v706_v50 = vpop.permute.xlu0 %705  ;;  %v688_v52 = vpop.xlane.xlu1 %687 }
 0x618   :  { %4226 = vpow2.f32 %v691_v48  ;;  %v690_v53 = vsub.f32 %v682_v42, %v688_v52  ;;  %3893 = vmatpush3.msra.mxu0 %v706_v50 }
 0x619   :  { %3902 = vmatprep.subr.mxu0 %v4322_v46 }
 0x61a   :  { %v693_v55 = vmul.f32 1.442695, %v690_v53 }
 0x61b   :  { %v782_v56 = vpop.permute.xlu1 %781 }
 0x61c   :  { %4228 = vpow2.f32 %v693_v55  ;;  %3898 = vmatpush3.msra.mxu1 %v782_v56 }
 0x61d   :  { %3907 = vmatprep.subr.mxu1 %v4322_v46 }
 0x61f   :  { %v860_v2 = vpop.permute.xlu1 %859 }
 0x622   :  { %v4227_v57 = vpop.eup %4226 }
 0x623   :  { %v695_v59 = vsel %vm193_vm6, %v4227_v57, 0.0  ;;  %v938_v6 = vpop.permute.xlu1 %937 }
 0x624   :  { %696 = vadd.xlane.f32.xlu0 %v695_v59 }
 0x626   :  { %v4229_v60 = vpop.eup %4228 }
 0x627   :  { %v698_v61 = vsel %vm193_vm6, %v4229_v60, 0.0  ;;  %v936_v9 = vpop.permute.xlu1 %935 }
 0x628   :  { %699 = vadd.xlane.f32.xlu0 %v698_v61 }
 0x63e   :  { %857 = vrot.lane.b32.xlu0 %v4452_v51, %s4330_s0 }
 0x6b1   :  { %v697_v62 = vpop.xlane.xlu0 %696 }
 0x6b2   :  { %4230 = vrcp.f32 %v697_v62 }
 0x6b5   :  { %v700_v63 = vpop.xlane.xlu0 %699 }
 0x6b6   :  { %4232 = vrcp.f32 %v700_v63 }
 0x6b9   :  { %v858_v8 = vpop.permute.xlu0 %857 }
 0x6bc   :  { %v4231_v3 = vpop.eup %4230 }
 0x6bd   :  { %v703_v4 = vmul.f32 %v4231_v3, %v4227_v57 }
 0x6bf   :  { %3895 = vmatmul.mubr.msk.f32.vlgmr.msra.gmra.mrb[4].mxu0 %vm193_vm6, %v703_v4 }
 0x6c0   :  { %v4233_v5 = vpop.eup %4232  ;;  %3903 = vmatpush3.xpose.msk.msra.mxu0 %vm193_vm6, %v860_v2  ;;  %3904 = vmatprep.mubr.msk.f32.mxu0 %vm4323_vm5, %v4322_v46 }
 0x6c1   :  { %v704_v7 = vmul.f32 %v4233_v5, %v4229_v60  ;;  %3912 = vmatprep.subr.mxu0 %v4322_v46 }
 0x6c3   :  { %3900 = vmatmul.mubr.msk.f32.vlgmr.msra.gmra.mrb[10].mxu1 %vm193_vm6, %v704_v7  ;;  %3905 = vmatmul.mubr.msk.f32.vlgmr.msra.gmra.mrb[6].mxu0 %vm193_vm6, %v858_v8 }
 0x6c4   :  { %3908 = vmatpush3.xpose.msk.msra.mxu1 %vm193_vm6, %v938_v6  ;;  %3909 = vmatprep.mubr.msk.f32.mxu1 %vm4323_vm5, %v4322_v46 }
 0x6c5   :  { %3917 = vmatprep.subr.mxu1 %v4322_v46  ;;  %3914 = vmatprep.mubr.msk.f32.mxu0 %vm4323_vm5, %v4322_v46 }
 0x6c7   :  { %3910 = vmatmul.mubr.msk.f32.vlgmr.msra.gmra.mrb[12].mxu1 %vm193_vm6, %v936_v9 }
 0x6c8   :  { %3919 = vmatprep.mubr.msk.f32.mxu1 %vm4323_vm5, %v4322_v46 }
 0x792   :  { %v4560_v10 = vpop.f32.mrb[4].mxu0 }
 0x793   :  { %v3896_v11 = vpop.f32.mrb[5].mxu0 }
 0x794   :  { %v4180_v11 = vpack.i.bf16 %v4413_v15, %v4408_v14 }
 0x796   :  { %v4562_v12 = vpop.f32.mrb[10].mxu1  ;;  %v931_v13 = vpop.f32.mrb[6].mxu0 }
 0x797   :  { %v1013_v17 = vmul.f32 0.35355338, %v931_v13  ;;  %v3901_v19 = vpop.f32.mrb[11].mxu1  ;;  %v3906_v20 = vpop.f32.mrb[7].mxu0 }
 0x799   :  { %v1015_v21 = vsel %vm36_vm7, %v1013_v17, -1e+09 }
 0x79a   :  { %v1009_v22 = vpop.f32.mrb[12].mxu1  ;;  %v1017_v23 = vsel %vm193_vm6, %v1015_v21, -inf }
 0x79b   :  { %v1014_v24 = vmul.f32 0.35355338, %v1009_v22  ;;  %1018 = vmax.xlane.f32.xlu0 %v1017_v23  ;;  %v3911_v25 = vpop.f32.mrb[13].mxu1 }
 0x79d   :  { %v1016_v26 = vsel %vm37_vm8, %v1014_v24, -1e+09 }
 0x79e   :  { %v1020_v27 = vsel %vm193_vm6, %v1016_v26, -inf }
 0x79f   :  { %1021 = vmax.xlane.f32.xlu1 %v1020_v27 }
 0x7b0   :  { %1115 = vrot.lane.b32.xlu1 %v4449_v49, %s4331_s9 }
 0x7b1   :  { %1039 = vrot.lane.b32.xlu0 %v4452_v51, %s4331_s9 }
 0x7b4   :  { %1193 = vrot.lane.b32.xlu1 %v4452_v51, %s4332_s10 }
 0x7b8   :  { %1271 = vrot.lane.b32.xlu1 %v4449_v49, %s4332_s10 }
 0x7bc   :  { %1269 = vrot.lane.b32.xlu1 %v4449_v49, %s4333_s11 }
 0x828   :  { %v1019_v28 = vpop.xlane.xlu0 %1018 }
 0x829   :  { %v1023_v29 = vsub.f32 %v1015_v21, %v1019_v28 }
 0x82b   :  { %v1025_v31 = vmul.f32 1.442695, %v1023_v29 }
 0x82c   :  { %v1040_v33 = vpop.permute.xlu0 %1039  ;;  %v1022_v34 = vpop.xlane.xlu1 %1021 }
 0x82d   :  { %4234 = vpow2.f32 %v1025_v31  ;;  %v1024_v35 = vsub.f32 %v1016_v26, %v1022_v34  ;;  %3913 = vmatpush3.msra.mxu0 %v1040_v33 }
 0x82e   :  { %3922 = vmatprep.subr.mxu0 %v4322_v46 }
 0x82f   :  { %v1027_v36 = vmul.f32 1.442695, %v1024_v35 }
 0x830   :  { %v1116_v37 = vpop.permute.xlu1 %1115 }
 0x831   :  { %4236 = vpow2.f32 %v1027_v36  ;;  %3918 = vmatpush3.msra.mxu1 %v1116_v37 }
 0x832   :  { %3927 = vmatprep.subr.mxu1 %v4322_v46 }
 0x834   :  { %v1194_v44 = vpop.permute.xlu1 %1193 }
 0x837   :  { %v4235_v38 = vpop.eup %4234 }
 0x838   :  { %v1029_v39 = vsel %vm193_vm6, %v4235_v38, 0.0  ;;  %v1272_v52 = vpop.permute.xlu1 %1271 }
 0x839   :  { %1030 = vadd.xlane.f32.xlu0 %v1029_v39 }
 0x83b   :  { %v4237_v40 = vpop.eup %4236 }
 0x83c   :  { %v1032_v41 = vsel %vm193_vm6, %v4237_v40, 0.0  ;;  %v1270_v56 = vpop.permute.xlu1 %1269 }
 0x83d   :  { %1033 = vadd.xlane.f32.xlu0 %v1032_v41 }
 0x853   :  { %1191 = vrot.lane.b32.xlu0 %v4452_v51, %s4333_s11 }
 0x8c6   :  { %v1031_v42 = vpop.xlane.xlu0 %1030 }
 0x8c7   :  { %4238 = vrcp.f32 %v1031_v42 }
 0x8ca   :  { %v1034_v43 = vpop.xlane.xlu0 %1033 }
 0x8cb   :  { %4240 = vrcp.f32 %v1034_v43 }
 0x8ce   :  { %v1192_v55 = vpop.permute.xlu0 %1191 }
 0x8d1   :  { %v4239_v45 = vpop.eup %4238 }
 0x8d2   :  { %v1037_v48 = vmul.f32 %v4239_v45, %v4235_v38 }
 0x8d4   :  { %3915 = vmatmul.mubr.msk.f32.vlgmr.msra.gmra.mrb[8].mxu0 %vm193_vm6, %v1037_v48 }
 0x8d5   :  { %v4241_v50 = vpop.eup %4240  ;;  %3923 = vmatpush3.xpose.msk.msra.mxu0 %vm193_vm6, %v1194_v44  ;;  %3924 = vmatprep.mubr.msk.f32.mxu0 %vm4323_vm5, %v4322_v46 }
 0x8d6   :  { %v1038_v53 = vmul.f32 %v4241_v50, %v4237_v40  ;;  %3932 = vmatprep.subr.mxu0 %v4322_v46 }
 0x8d8   :  { %3920 = vmatmul.mubr.msk.f32.vlgmr.msra.gmra.mrb[14].mxu1 %vm193_vm6, %v1038_v53  ;;  %3925 = vmatmul.mubr.msk.f32.vlgmr.msra.gmra.mrb[10].mxu0 %vm193_vm6, %v1192_v55 }
 0x8d9   :  { %3928 = vmatpush3.xpose.msk.msra.mxu1 %vm193_vm6, %v1272_v52  ;;  %3929 = vmatprep.mubr.msk.f32.mxu1 %vm4323_vm5, %v4322_v46 }
 0x8da   :  { %3937 = vmatprep.subr.mxu1 %v4322_v46  ;;  %3934 = vmatprep.mubr.msk.f32.mxu0 %vm4323_vm5, %v4322_v46 }
 0x8dc   :  { %3930 = vmatmul.mubr.msk.f32.vlgmr.msra.gmra.mrb[16].mxu1 %vm193_vm6, %v1270_v56 }
 0x8dd   :  { %3939 = vmatprep.mubr.msk.f32.mxu1 %vm4323_vm5, %v4322_v46 }
 0x9a7   :  { %v1111_v57 = vpop.f32.mrb[8].mxu0 }
 0x9a8   :  { %v3916_v59 = vpop.f32.mrb[9].mxu0 }
 0x9ab   :  { %v1187_v60 = vpop.f32.mrb[14].mxu1  ;;  %v1265_v61 = vpop.f32.mrb[10].mxu0 }
 0x9ac   :  { %v1347_v62 = vmul.f32 0.35355338, %v1265_v61  ;;  %v3921_v63 = vpop.f32.mrb[15].mxu1  ;;  %v3926_v2 = vpop.f32.mrb[11].mxu0 }
 0x9ad   :  { %v1725_v2 = vld [vmem:[%s4990_s4 + $0x8] sm:$0xff] }
 0x9ae   :  { %v1349_v3 = vsel %vm36_vm7, %v1347_v62, -1e+09 }
 0x9af   :  { %v1343_v4 = vpop.f32.mrb[16].mxu1  ;;  %v1351_v5 = vsel %vm193_vm6, %v1349_v3, -inf }
 0x9b0   :  { %v1348_v6 = vmul.f32 0.35355338, %v1343_v4  ;;  %1352 = vmax.xlane.f32.xlu0 %v1351_v5  ;;  %v3931_v7 = vpop.f32.mrb[17].mxu1 }
 0x9b2   :  { %v1350_v8 = vsel %vm37_vm8, %v1348_v6, -1e+09  ;;  %vm3561_vm8 = vcmask 523264  }
 0x9b3   :  { %v1354_v9 = vsel %vm193_vm6, %v1350_v8, -inf }
 0x9b4   :  { %1355 = vmax.xlane.f32.xlu1 %v1354_v9 }
 0x9c5   :  { %1449 = vrot.lane.b32.xlu1 %v4449_v49, %s4334_s12 }
 0x9c9   :  { %4181 = vrot.lane.b32.xlu1 %v4180_v11, %s4335_s13 }
 0x9cd   :  { %4186 = vrot.lane.b32.xlu1 %v4185_v54, %s4335_s13 }
 0x9d1   :  { %1529 = vrot.lane.b32.xlu1 %v4562_v12, %s4336_s14 }
 0x9d5   :  { %1537 = vrot.lane.b32.xlu1 %v1187_v60, %s4337_s15 }
 0xa3d   :  { %v1353_v58 = vpop.xlane.xlu0 %1352 }
 0xa3e   :  { %v1357_v49 = vsub.f32 %v1349_v3, %v1353_v58 }
 0xa40   :  { %v1359_v13 = vmul.f32 1.442695, %v1357_v49  ;;  %v1727_v49 = vld [vmem:[%s4990_s4 + $0x38] sm:$0xff] }
 0xa41   :  { %v1356_v17 = vpop.xlane.xlu1 %1355 }
 0xa42   :  { %4242 = vpow2.f32 %v1359_v13  ;;  %v1358_v14 = vsub.f32 %v1350_v8, %v1356_v17  ;;  %v1728_v13 = vld [vmem:[%s4990_s4 + $0x50] sm:$0xff] }
 0xa43   :  { %v4676_v17 = vpack.i.bf16 %v1728_v13, %v1727_v49 }
 0xa44   :  { %v1361_v15 = vmul.f32 1.442695, %v1358_v14 }
 0xa45   :  { %v1450_v19 = vpop.permute.xlu1 %1449 }
 0xa46   :  { %4244 = vpow2.f32 %v1361_v15  ;;  %3938 = vmatpush3.msra.mxu1 %v1450_v19 }
 0xa49   :  { %v4182_v22 = vpop.permute.xlu1 %4181 }
 0xa4a   :  { %v4184_v23 = vunpack.i.h.bf16 %v4182_v22  ;;  %v4183_v24 = vunpack.i.l.bf16 %v4182_v22 }
 0xa4c   :  { %v4243_v16 = vpop.eup %4242  ;;  %v4104_v26 = vpack.c.bf16 %v4184_v23, %v4183_v24 }
 0xa4d   :  { %v1363_v18 = vsel %vm193_vm6, %v4243_v16, 0.0  ;;  %v4187_v27 = vpop.permute.xlu1 %4186 }
 0xa4e   :  { %1364 = vadd.xlane.f32.xlu0 %v1363_v18  ;;  %v4189_v28 = vunpack.i.h.bf16 %v4187_v27  ;;  %v4188_v29 = vunpack.i.l.bf16 %v4187_v27  ;;  %v32_v18 = vld [vmem:[%s4987_s1] sm:$0xff] }
 0xa50   :  { %v4245_v20 = vpop.eup %4244  ;;  %v4108_v33 = vpack.c.bf16 %v4189_v28, %v4188_v29 }
 0xa51   :  { %v1366_v12 = vsel %vm193_vm6, %v4245_v20, 0.0  ;;  %v1530_v41 = vpop.permute.xlu1 %1529 }
 0xa52   :  { %1367 = vadd.xlane.f32.xlu0 %v1366_v12  ;;  %v1550_v52 = vsel %vm193_vm6, %v4522_v32, %v1530_v41 }
 0xa55   :  { %v1538_v44 = vpop.permute.xlu1 %1537 }
 0xa68   :  { %1373 = vrot.lane.b32.xlu0 %v4452_v51, %s4334_s12 }
 0xa6c   :  { %1527 = vrot.lane.b32.xlu0 %v4560_v10, %s4336_s14 }
 0xa70   :  { %1535 = vrot.lane.b32.xlu0 %v1111_v57, %s4337_s15 }
 0xadb   :  { %v1365_v21 = vpop.xlane.xlu0 %1364 }
 0xadc   :  { %4246 = vrcp.f32 %v1365_v21  ;;  %v4688_v21 = vld [vmem:[%s4992_s6 + $0x1] ss:$0 sm:$0xff] }
 0xadf   :  { %v1368_v25 = vpop.xlane.xlu0 %1367 }
 0xae0   :  { %4248 = vrcp.f32 %v1368_v25 }
 0xae3   :  { %v1374_v31 = vpop.permute.xlu0 %1373 }
 0xae4   :  { %3933 = vmatpush3.msra.mxu0 %v1374_v31 }
 0xae5   :  { %4105 = vmatprep.subr.bf16.mxu0 %v4104_v26 }
 0xae6   :  { %v4247_v51 = vpop.eup %4246 }
 0xae7   :  { %v1371_v34 = vmul.f32 %v4247_v51, %v4243_v16  ;;  %v1528_v40 = vpop.permute.xlu0 %1527 }
 0xae8   :  { %v1549_v43 = vsel %vm193_vm6, %v4520_v30, %v1528_v40 }
 0xae9   :  { %3935 = vmatmul.mubr.msk.f32.vlgmr.msra.gmra.mrb[12].mxu0 %vm193_vm6, %v1371_v34 }
 0xaea   :  { %v4249_v10 = vpop.eup %4248  ;;  %4107 = vmatpush3.bf16.msra.mxu0 %v4104_v26 }
 0xaeb   :  { %v1372_v35 = vmul.f32 %v4249_v10, %v4245_v20  ;;  %4109 = vmatprep.subr.bf16.mxu0 %v4108_v33  ;;  %v1536_v42 = vpop.permute.xlu0 %1535  ;;  %v4116_v20 = vpack.c.bf16 %v1728_v13, %v1727_v49 }
 0xaec   :  { %v1552_v45 = vsel %vm1551_vm10, %v1549_v43, %v1536_v42  ;;  %v3700_v43 = vld [vmem:[%s4993_s7 + $0x1] ss:$0 sm:$0xff] }
 0xaed   :  { %3940 = vmatmul.mubr.msk.f32.vlgmr.msra.gmra.mrb[18].mxu1 %vm193_vm6, %v1372_v35 }
 0xaee   :  { %4111 = vmatpush3.bf16.msra.mxu0 %v4108_v33  ;;  %v33_v33 = vld [vmem:[%s4987_s1 + $0x8] sm:$0xff] }
 0xbbc   :  { %v1445_v36 = vpop.f32.mrb[12].mxu0 }
 0xbbd   :  { %1543 = vrot.lane.b32.xlu0 %v1445_v36, %s4338_s16  ;;  %v3936_v37 = vpop.f32.mrb[13].mxu0 }
 0xbc0   :  { %v1521_v38 = vpop.f32.mrb[18].mxu1 }
 0xbc1   :  { %1545 = vrot.lane.b32.xlu1 %v1521_v38, %s4338_s16  ;;  %v3941_v39 = vpop.f32.mrb[19].mxu1  ;;  %1666 = vrot.lane.b32.xlu0 %v4446_v47, %s4335_s13  ;;  %v1553_v47 = vsel %vm1551_vm10, %v1550_v52, %v1538_v44 }
 0xc2f   :  { %v1544_v48 = vpop.permute.xlu0 %1543 }
 0xc30   :  { %v1555_v50 = vsel %vm1554_vm9, %v1552_v45, %v1544_v48  ;;  %v3701_v48 = vld [vmem:[%s4993_s7 + $0x4] ss:$0 sm:$0xff] }
 0xc31   :  { %3950 = vmatprep.mubr.msk.f32.mxu0 %vm44_vm0, %v1555_v50 }
 0xc33   :  { %v1546_v53 = vpop.permute.xlu1 %1545  ;;  %v1667_v30 = vpop.permute.xlu0 %1666 }
 0xc34   :  { %v1556_v55 = vsel %vm1554_vm9, %v1553_v47, %v1546_v53 }
 0xc35   :  { %3951 = vmatmul.mubr.msk.f32.vlgmr.msra.gmra.mrb[14].mxu0 %vm44_vm0, %v1556_v55 }
 0xc36   :  { %3972 = vmatprep.mubr.msk.f32.mxu0 %vm44_vm0, %v32_v18 }
 0xd08   :  { %v3952_v56 = vpop.f32.mrb[14].mxu0 }
 0xd09   :  { %v1659_v57 = vadd.f32 %v3952_v56, %v4395_v1  ;;  %v1649_v59 = vpop.f32.mrb[15].mxu0 }
 0xd0a   :  { %v1658_v60 = vadd.f32 %v1649_v59, %v4390_v0  ;;  %v1726_v0 = vld [vmem:[%s4990_s4 + $0x20] sm:$0xff] }
 0xd0b   :  { %v4640_v61 = vadd.f32 %v1667_v30, %v1659_v57  ;;  %v4654_v1 = vpack.i.bf16 %v1726_v0, %v1725_v2  ;;  %v4112_v16 = vpack.c.bf16 %v1726_v0, %v1725_v2 }
 0xd0c   :  { %v4642_v62 = vadd.f32 %v1667_v30, %v1658_v60 }
 0xd0d   :  { %v1676_v32 = vsel %vm44_vm0, %v4640_v61, 0.0  ;;  %4113 = vmatprep.subr.bf16.mxu1 %v4112_v16 }
 0xd0e   :  { %1677 = vadd.xlane.f32.xlu0 %v1676_v32  ;;  %v1673_v63 = vsel %vm44_vm0, %v4642_v62, 0.0  ;;  %4115 = vmatpush3.bf16.msra.mxu1 %v4112_v16 }
 0xd0f   :  { %1674 = vadd.xlane.f32.xlu1 %v1673_v63  ;;  %4117 = vmatprep.subr.bf16.mxu1 %v4116_v20 }
 0xd12   :  { %4119 = vmatpush3.bf16.msra.mxu1 %v4116_v20 }
 0xd13   :  { %3975 = vmatprep.subr.mxu1 %v4322_v46 }
 0xd20   :  { %4191 = vrot.lane.b32.xlu1 %v4654_v1, %s4324_s22 }
 0xd24   :  { %1833 = vrot.lane.b32.xlu1 %v4688_v21, %s4324_s22 }
 0xd9b   :  { %v1678_v3 = vpop.xlane.xlu0 %1677 }
 0xd9c   :  { %v1680_v4 = vmul.f32 0.03125, %v1678_v3  ;;  %v1675_v5 = vpop.xlane.xlu1 %1674 }
 0xd9d   :  { %v1679_v6 = vmul.f32 0.03125, %v1675_v5  ;;  %v38_v5 = vld [vmem:[%s4989_s3] sm:$0x1] }
 0xd9e   :  { %v4659_v7 = vsub.f32 %v4640_v61, %v1680_v4  ;;  %v2073_v4 = vlaneseq  ;;  %vm40_vm15 = vcmp.ne.f32.partialorder %v38_v5, 0.0 }
 0xd9f   :  { %v4662_v8 = vsub.f32 %v4642_v62, %v1679_v6 }
 0xda0   :  { %v1684_v54 = vmul.f32 %v4659_v7, %v4659_v7  ;;  %v4192_v14 = vpop.permute.xlu1 %4191  ;;  %v1698_v52 = vmul.f32 %v3700_v43, %v4659_v7  ;;  %v2074_v6 = vshrl.u32 %v2073_v4, 7  ;;  %v39_v7 = vld [vmem:[%s4989_s3 + $0x1] sm:$0x1] }
 0xda1   :  { %v1683_v9 = vmul.f32 %v4662_v8, %v4662_v8  ;;  %v4194_v15 = vunpack.i.h.bf16 %v4192_v14  ;;  %v4193_v19 = vunpack.i.l.bf16 %v4192_v14  ;;  %v1697_v44 = vmul.f32 %v3700_v43, %v4662_v8 }
 0xda2   :  { %v1688_v58 = vsel %vm44_vm0, %v1684_v54, 0.0  ;;  %v2075_v8 = vsub.s32 0, %v2074_v6  ;;  %vm41_vm1 = vcmp.ne.f32.partialorder %v39_v7, 0.0 }
 0xda3   :  { %v1685_v11 = vsel %vm44_vm0, %v1683_v9, 0.0  ;;  %v4120_v12 = vpack.c.bf16 %v4194_v15, %v4193_v19  ;;  %v4339_v9 = vmov 0  }
 0xda4   :  { %1686 = vadd.xlane.f32.xlu0 %v1685_v11  ;;  %v1834_v30 = vpop.permute.xlu1 %1833  ;;  %v2071_v11 = vsel %vm40_vm15, 1, %v4339_v9 }
 0xda5   :  { %4121 = vmatprep.subr.bf16.mxu0 %v4120_v12  ;;  %v4741_v54 = vrot.slane %v2071_v11, %v2075_v8 }
 0xda6   :  { %4123 = vmatpush3.bf16.msra.mxu0 %v4120_v12 }
 0xda7   :  { %vm2081_vm2 = vcmp.eq.s32.totalorder %v4741_v54, 1 }
 0xda8   :  { %1689 = vadd.xlane.f32.xlu0 %v1688_v58  ;;  %v2072_v58 = vsel %vm41_vm1, 1, %v4339_v9 }
 0xda9   :  { %v4744_v13 = vrot.slane %v2072_v58, %v2075_v8 }
 0xdab   :  { %vm2082_vm3 = vcmp.eq.s32.totalorder %v4744_v13, 1 }
 0xdbe   :  { %4196 = vrot.lane.b32.xlu0 %v4676_v17, %s4324_s22 }
 0xe31   :  { %v1687_v22 = vpop.xlane.xlu0 %1686 }
 0xe32   :  { %v1691_v23 = vmul.f32 0.032258064, %v1687_v22 }
 0xe34   :  { %4250 = vrsqrt.f32 %v1691_v23  ;;  %vm1701_vm11 = vcmp.eq.f32.partialorder %v1691_v23, inf  ;;  %v1704_v34 = vand.u32 2147483648, %v1691_v23  ;;  %vm1703_vm12 = vcmp.eq.f32.partialorder %v1691_v23, 0.0 }
 0xe35   :  { %v1690_v24 = vpop.xlane.xlu0 %1689 }
 0xe36   :  { %v1692_v25 = vmul.f32 0.032258064, %v1690_v24 }
 0xe38   :  { %4252 = vrsqrt.f32 %v1692_v25  ;;  %vm1708_vm13 = vcmp.eq.f32.partialorder %v1692_v25, inf  ;;  %v1711_v39 = vand.u32 2147483648, %v1692_v25  ;;  %vm1710_vm14 = vcmp.eq.f32.partialorder %v1692_v25, 0.0 }
 0xe39   :  { %v4197_v26 = vpop.permute.xlu0 %4196 }
 0xe3a   :  { %v4199_v27 = vunpack.i.h.bf16 %v4197_v26  ;;  %v4198_v28 = vunpack.i.l.bf16 %v4197_v26 }
 0xe3c   :  { %v4124_v29 = vpack.c.bf16 %v4199_v27, %v4198_v28 }
 0xe3e   :  { %v4251_v31 = vpop.eup %4250  ;;  %4125 = vmatprep.subr.bf16.mxu0 %v4124_v29 }
 0xe3f   :  { %v1700_v51 = vmul.f32 %v4251_v31, %v1691_v23  ;;  %4127 = vmatpush3.bf16.msra.mxu0 %v4124_v29 }
 0xe40   :  { %3985 = vmatprep.subr.mxu0 %v4322_v46 }
 0xe41   :  { %v1702_v10 = vsel %vm1701_vm11, %v1691_v23, %v1700_v51 }
 0xe42   :  { %v4253_v35 = vpop.eup %4252  ;;  %v1705_v36 = vsel %vm1703_vm12, %v1704_v34, %v1702_v10  ;;  %3973 = vmatmul.mubr.msk.f32.vlgmr.msra.gmra.mrb[16].mxu0 %vm44_vm0, %v33_v33 }
 0xe43   :  { %v1707_v37 = vmul.f32 %v4253_v35, %v1692_v25  ;;  %v1713_v38 = vadd.f32 1e-06, %v1705_v36  ;;  %3987 = vmatprep.mubr.msk.f32.mxu0 %vm4323_vm5, %v4322_v46 }
 0xe45   :  { %v1709_v40 = vsel %vm1708_vm13, %v1692_v25, %v1707_v37  ;;  %4254 = vrcp.f32 %v1713_v38 }
 0xe46   :  { %v1712_v41 = vsel %vm1710_vm14, %v1711_v39, %v1709_v40 }
 0xe47   :  { %v1714_v42 = vadd.f32 1e-06, %v1712_v41 }
 0xe49   :  { %4256 = vrcp.f32 %v1714_v42 }
 0xe4f   :  { %v4255_v45 = vpop.eup %4254 }
 0xe50   :  { %v1716_v50 = vmul.f32 %v4255_v45, %v1697_v44 }
 0xe52   :  { %v1723_v47 = vadd.f32 %v3701_v48, %v1716_v50 }
 0xe53   :  { %v4257_v53 = vpop.eup %4256 }
 0xe54   :  { %v1718_v55 = vmul.f32 %v4257_v53, %v1698_v52  ;;  %3961 = vmatprep.mubr.msk.f32.mxu1 %vm44_vm0, %v1723_v47 }
 0xe56   :  { %v1724_v56 = vadd.f32 %v3701_v48, %v1718_v55 }
 0xe58   :  { %3962 = vmatmul.mubr.msk.f32.vlgmr.msra.gmra.mrb[20].mxu1 %vm44_vm0, %v1724_v56 }
 0xe59   :  { %3977 = vmatprep.mubr.msk.f32.mxu1 %vm4323_vm5, %v4322_v46 }
 0xf15   :  { %v3974_v57 = vpop.f32.mrb[16].mxu0 }
 0xf16   :  { %v1908_v59 = vpop.f32.mrb[17].mxu0  ;;  %v4719_v0 = vadd.f32 %v3974_v57, %v1834_v30 }
 0xf17   :  { %v4711_v60 = vadd.f32 %v1908_v59, %v1834_v30 }
 0xf19   :  { %3976 = vmatpush3.xpose.msk.msra.mxu1 %vm193_vm6, %v4711_v60 }
 0xf1a   :  { %3980 = vmatprep.subr.mxu1 %v4322_v46 }
 0xf2b   :  { %v3963_v32 = vpop.f32.mrb[20].mxu1 }
 0xf2c   :  { %v1808_v63 = vpop.f32.mrb[21].mxu1  ;;  %v4728_v3 = vadd.f32 %v3963_v32, %v4688_v21 }
 0xf2d   :  { %v4717_v2 = vadd.f32 %v4688_v21, %v1808_v63 }
 0xf2f   :  { %3978 = vmatmul.mubr.msk.f32.vlgmr.msra.gmra.mrb[22].mxu1 %vm193_vm6, %v4717_v2 }
 0xf30   :  { %3981 = vmatpush3.xpose.msk.msra.mxu1 %vm193_vm6, %v4719_v0  ;;  %3982 = vmatprep.mubr.msk.f32.mxu1 %vm4323_vm5, %v4322_v46 }
 0xf31   :  { %3990 = vmatprep.subr.mxu1 %v4322_v46 }
 0xf33   :  { %3983 = vmatmul.mubr.msk.f32.vlgmr.msra.gmra.mrb[24].mxu1 %vm193_vm6, %v4728_v3 }
 0xf34   :  { %3992 = vmatprep.mubr.msk.f32.mxu1 %vm4323_vm5, %v4322_v46 }
0x1002   :  { %v1989_v49 = vpop.f32.mrb[22].mxu1 }
0x1003   :  { %v2069_v14 = vmul.f32 0.35355338, %v1989_v49  ;;  %v3979_v15 = vpop.f32.mrb[23].mxu1 }
0x1005   :  { %v2083_v19 = vsel %vm2081_vm2, %v2069_v14, -1e+09 }
0x1006   :  { %v2065_v16 = vpop.f32.mrb[24].mxu1  ;;  %v2085_v18 = vsel %vm193_vm6, %v2083_v19, -inf }
0x1007   :  { %v2070_v20 = vmul.f32 0.35355338, %v2065_v16  ;;  %2086 = vmax.xlane.f32.xlu1 %v2085_v18  ;;  %v3984_v12 = vpop.f32.mrb[25].mxu1 }
0x1009   :  { %v2084_v22 = vsel %vm2082_vm3, %v2070_v20, -1e+09 }
0x100a   :  { %v2088_v23 = vsel %vm193_vm6, %v2084_v22, -inf }
0x100b   :  { %2089 = vmax.xlane.f32.xlu0 %v2088_v23 }
0x1018   :  { %2183 = vrot.lane.b32.xlu1 %v4719_v0, %s4324_s22 }
0x101c   :  { %2261 = vrot.lane.b32.xlu1 %v4711_v60, %s4327_s28 }
0x1020   :  { %2339 = vrot.lane.b32.xlu1 %v4719_v0, %s4327_s28 }
0x1021   :  { %2107 = vrot.lane.b32.xlu0 %v4711_v60, %s4324_s22 }
0x1094   :  { %v2087_v24 = vpop.xlane.xlu1 %2086 }
0x1095   :  { %v2091_v25 = vsub.f32 %v2083_v19, %v2087_v24 }
0x1097   :  { %v2093_v26 = vmul.f32 1.442695, %v2091_v25 }
0x1098   :  { %v2184_v27 = vpop.permute.xlu1 %2183  ;;  %v2090_v28 = vpop.xlane.xlu0 %2089 }
0x1099   :  { %4258 = vpow2.f32 %v2093_v26  ;;  %v2092_v29 = vsub.f32 %v2084_v22, %v2090_v28  ;;  %3991 = vmatpush3.msra.mxu1 %v2184_v27 }
0x109a   :  { %4000 = vmatprep.subr.mxu1 %v4322_v46 }
0x109b   :  { %v2095_v31 = vmul.f32 1.442695, %v2092_v29 }
0x109c   :  { %v2108_v51 = vpop.permute.xlu0 %2107  ;;  %v2262_v36 = vpop.permute.xlu1 %2261 }
0x109d   :  { %4260 = vpow2.f32 %v2095_v31  ;;  %3986 = vmatpush3.msra.mxu0 %v2108_v51 }
0x109e   :  { %3995 = vmatprep.subr.mxu0 %v4322_v46 }
0x10a0   :  { %v2340_v37 = vpop.permute.xlu1 %2339 }
0x10a3   :  { %v4259_v33 = vpop.eup %4258 }
0x10a4   :  { %v2097_v34 = vsel %vm193_vm6, %v4259_v33, 0.0 }
0x10a5   :  { %2098 = vadd.xlane.f32.xlu0 %v2097_v34 }
0x10a7   :  { %v4261_v10 = vpop.eup %4260 }
0x10a8   :  { %v2100_v35 = vsel %vm193_vm6, %v4261_v10, 0.0 }
0x10a9   :  { %2101 = vadd.xlane.f32.xlu1 %v2100_v35 }
0x10ba   :  { %2337 = vrot.lane.b32.xlu1 %v4728_v3, %s4327_s28 }
0x10bb   :  { %2259 = vrot.lane.b32.xlu0 %v4717_v2, %s4327_s28 }
0x1132   :  { %v2099_v38 = vpop.xlane.xlu0 %2098 }
0x1133   :  { %4262 = vrcp.f32 %v2099_v38 }
0x1136   :  { %v2102_v39 = vpop.xlane.xlu1 %2101  ;;  %v2260_v44 = vpop.permute.xlu0 %2259 }
0x1137   :  { %4264 = vrcp.f32 %v2102_v39 }
0x113a   :  { %v2338_v45 = vpop.permute.xlu1 %2337 }
0x113d   :  { %v4263_v40 = vpop.eup %4262 }
0x113e   :  { %v2105_v41 = vmul.f32 %v4263_v40, %v4259_v33 }
0x1140   :  { %3988 = vmatmul.mubr.msk.f32.vlgmr.msra.gmra.mrb[18].mxu0 %vm193_vm6, %v2105_v41 }
0x1141   :  { %v4265_v42 = vpop.eup %4264  ;;  %3996 = vmatpush3.xpose.msk.msra.mxu0 %vm193_vm6, %v2262_v36  ;;  %3997 = vmatprep.mubr.msk.f32.mxu0 %vm4323_vm5, %v4322_v46 }
0x1142   :  { %v2106_v43 = vmul.f32 %v4265_v42, %v4261_v10  ;;  %4005 = vmatprep.subr.mxu0 %v4322_v46 }
0x1144   :  { %3993 = vmatmul.mubr.msk.f32.vlgmr.msra.gmra.mrb[26].mxu1 %vm193_vm6, %v2106_v43  ;;  %3998 = vmatmul.mubr.msk.f32.vlgmr.msra.gmra.mrb[20].mxu0 %vm193_vm6, %v2260_v44 }
0x1145   :  { %4001 = vmatpush3.xpose.msk.msra.mxu1 %vm193_vm6, %v2340_v37  ;;  %4002 = vmatprep.mubr.msk.f32.mxu1 %vm4323_vm5, %v4322_v46 }
0x1146   :  { %4010 = vmatprep.subr.mxu1 %v4322_v46  ;;  %4007 = vmatprep.mubr.msk.f32.mxu0 %vm4323_vm5, %v4322_v46 }
0x1148   :  { %4003 = vmatmul.mubr.msk.f32.vlgmr.msra.gmra.mrb[28].mxu1 %vm193_vm6, %v2338_v45 }
0x1149   :  { %4012 = vmatprep.mubr.msk.f32.mxu1 %vm4323_vm5, %v4322_v46 }
0x1213   :  { %v4785_v48 = vpop.f32.mrb[18].mxu0 }
0x1214   :  { %v3989_v50 = vpop.f32.mrb[19].mxu0 }
0x1217   :  { %v4787_v52 = vpop.f32.mrb[26].mxu1  ;;  %v2333_v47 = vpop.f32.mrb[20].mxu0 }
0x1218   :  { %v2415_v53 = vmul.f32 0.35355338, %v2333_v47  ;;  %v3994_v55 = vpop.f32.mrb[27].mxu1  ;;  %v3999_v56 = vpop.f32.mrb[21].mxu0 }
0x121a   :  { %v2417_v30 = vsel %vm2081_vm2, %v2415_v53, -1e+09 }
0x121b   :  { %v2411_v57 = vpop.f32.mrb[28].mxu1  ;;  %v2419_v59 = vsel %vm193_vm6, %v2417_v30, -inf }
0x121c   :  { %v2416_v32 = vmul.f32 0.35355338, %v2411_v57  ;;  %2420 = vmax.xlane.f32.xlu0 %v2419_v59  ;;  %v4004_v63 = vpop.f32.mrb[29].mxu1 }
0x121e   :  { %v2418_v4 = vsel %vm2082_vm3, %v2416_v32, -1e+09 }
0x121f   :  { %v2422_v5 = vsel %vm193_vm6, %v2418_v4, -inf }
0x1220   :  { %2423 = vmax.xlane.f32.xlu1 %v2422_v5 }
0x1231   :  { %2517 = vrot.lane.b32.xlu1 %v4719_v0, %s4326_s2 }
0x1232   :  { %2441 = vrot.lane.b32.xlu0 %v4711_v60, %s4326_s2 }
0x1235   :  { %2595 = vrot.lane.b32.xlu1 %v4711_v60, %s4330_s0 }
0x1239   :  { %2673 = vrot.lane.b32.xlu1 %v4719_v0, %s4330_s0 }
0x123d   :  { %2671 = vrot.lane.b32.xlu1 %v4728_v3, %s4330_s0 }
0x12a9   :  { %v2421_v6 = vpop.xlane.xlu0 %2420 }
0x12aa   :  { %v2425_v7 = vsub.f32 %v2417_v30, %v2421_v6 }
0x12ac   :  { %v2427_v8 = vmul.f32 1.442695, %v2425_v7 }
0x12ad   :  { %v2442_v9 = vpop.permute.xlu0 %2441  ;;  %v2424_v11 = vpop.xlane.xlu1 %2423 }
0x12ae   :  { %4266 = vpow2.f32 %v2427_v8  ;;  %v2426_v58 = vsub.f32 %v2418_v4, %v2424_v11  ;;  %4006 = vmatpush3.msra.mxu0 %v2442_v9 }
0x12af   :  { %4015 = vmatprep.subr.mxu0 %v4322_v46 }
0x12b0   :  { %v2429_v49 = vmul.f32 1.442695, %v2426_v58 }
0x12b1   :  { %v2518_v14 = vpop.permute.xlu1 %2517 }
0x12b2   :  { %4268 = vpow2.f32 %v2429_v49  ;;  %4011 = vmatpush3.msra.mxu1 %v2518_v14 }
0x12b3   :  { %4020 = vmatprep.subr.mxu1 %v4322_v46 }
0x12b5   :  { %v2596_v22 = vpop.permute.xlu1 %2595 }
0x12b8   :  { %v4267_v15 = vpop.eup %4266 }
0x12b9   :  { %v2431_v19 = vsel %vm193_vm6, %v4267_v15, 0.0  ;;  %v2674_v26 = vpop.permute.xlu1 %2673 }
0x12ba   :  { %2432 = vadd.xlane.f32.xlu0 %v2431_v19 }
0x12bc   :  { %v4269_v16 = vpop.eup %4268 }
0x12bd   :  { %v2434_v18 = vsel %vm193_vm6, %v4269_v16, 0.0  ;;  %v2672_v29 = vpop.permute.xlu1 %2671 }
0x12be   :  { %2435 = vadd.xlane.f32.xlu0 %v2434_v18 }
0x12d4   :  { %2593 = vrot.lane.b32.xlu0 %v4717_v2, %s4330_s0 }
0x1347   :  { %v2433_v20 = vpop.xlane.xlu0 %2432 }
0x1348   :  { %4270 = vrcp.f32 %v2433_v20 }
0x134b   :  { %v2436_v12 = vpop.xlane.xlu0 %2435 }
0x134c   :  { %4272 = vrcp.f32 %v2436_v12 }
0x134f   :  { %v2594_v28 = vpop.permute.xlu0 %2593 }
0x1352   :  { %v4271_v23 = vpop.eup %4270 }
0x1353   :  { %v2439_v24 = vmul.f32 %v4271_v23, %v4267_v15 }
0x1355   :  { %4008 = vmatmul.mubr.msk.f32.vlgmr.msra.gmra.mrb[22].mxu0 %vm193_vm6, %v2439_v24 }
0x1356   :  { %v4273_v25 = vpop.eup %4272  ;;  %4016 = vmatpush3.xpose.msk.msra.mxu0 %vm193_vm6, %v2596_v22  ;;  %4017 = vmatprep.mubr.msk.f32.mxu0 %vm4323_vm5, %v4322_v46 }
0x1357   :  { %v2440_v27 = vmul.f32 %v4273_v25, %v4269_v16  ;;  %4025 = vmatprep.subr.mxu0 %v4322_v46 }
0x1359   :  { %4013 = vmatmul.mubr.msk.f32.vlgmr.msra.gmra.mrb[30].mxu1 %vm193_vm6, %v2440_v27  ;;  %4018 = vmatmul.mubr.msk.f32.vlgmr.msra.gmra.mrb[24].mxu0 %vm193_vm6, %v2594_v28 }
0x135a   :  { %4021 = vmatpush3.xpose.msk.msra.mxu1 %vm193_vm6, %v2674_v26  ;;  %4022 = vmatprep.mubr.msk.f32.mxu1 %vm4323_vm5, %v4322_v46 }
0x135b   :  { %4030 = vmatprep.subr.mxu1 %v4322_v46  ;;  %4027 = vmatprep.mubr.msk.f32.mxu0 %vm4323_vm5, %v4322_v46 }
0x135d   :  { %4023 = vmatmul.mubr.msk.f32.vlgmr.msra.gmra.mrb[32].mxu1 %vm193_vm6, %v2672_v29 }
0x135e   :  { %4032 = vmatprep.mubr.msk.f32.mxu1 %vm4323_vm5, %v4322_v46 }
0x1428   :  { %v4827_v31 = vpop.f32.mrb[22].mxu0 }
0x1429   :  { %v4009_v51 = vpop.f32.mrb[23].mxu0 }
0x142c   :  { %v4829_v33 = vpop.f32.mrb[30].mxu1  ;;  %v2667_v34 = vpop.f32.mrb[24].mxu0 }
0x142d   :  { %v2749_v10 = vmul.f32 0.35355338, %v2667_v34  ;;  %v4014_v35 = vpop.f32.mrb[31].mxu1  ;;  %v4019_v36 = vpop.f32.mrb[25].mxu0 }
0x142f   :  { %v2751_v37 = vsel %vm2081_vm2, %v2749_v10, -1e+09 }
0x1430   :  { %v2745_v38 = vpop.f32.mrb[32].mxu1  ;;  %v2753_v39 = vsel %vm193_vm6, %v2751_v37, -inf }
0x1431   :  { %v2750_v40 = vmul.f32 0.35355338, %v2745_v38  ;;  %2754 = vmax.xlane.f32.xlu0 %v2753_v39  ;;  %v4024_v41 = vpop.f32.mrb[33].mxu1 }
0x1433   :  { %v2752_v42 = vsel %vm2082_vm3, %v2750_v40, -1e+09 }
0x1434   :  { %v2756_v43 = vsel %vm193_vm6, %v2752_v42, -inf }
0x1435   :  { %2757 = vmax.xlane.f32.xlu1 %v2756_v43 }
0x1446   :  { %2851 = vrot.lane.b32.xlu1 %v4719_v0, %s4329_s30 }
0x1447   :  { %2775 = vrot.lane.b32.xlu0 %v4711_v60, %s4329_s30 }
0x144a   :  { %2929 = vrot.lane.b32.xlu1 %v4711_v60, %s4333_s11 }
0x144e   :  { %3007 = vrot.lane.b32.xlu1 %v4719_v0, %s4333_s11 }
0x1452   :  { %3005 = vrot.lane.b32.xlu1 %v4728_v3, %s4333_s11 }
0x14be   :  { %v2755_v44 = vpop.xlane.xlu0 %2754 }
0x14bf   :  { %v2759_v45 = vsub.f32 %v2751_v37, %v2755_v44 }
0x14c1   :  { %v2761_v50 = vmul.f32 1.442695, %v2759_v45 }
0x14c2   :  { %v2776_v47 = vpop.permute.xlu0 %2775  ;;  %v2758_v53 = vpop.xlane.xlu1 %2757 }
0x14c3   :  { %4274 = vpow2.f32 %v2761_v50  ;;  %v2760_v55 = vsub.f32 %v2752_v42, %v2758_v53  ;;  %4026 = vmatpush3.msra.mxu0 %v2776_v47 }
0x14c4   :  { %4035 = vmatprep.subr.mxu0 %v4322_v46 }
0x14c5   :  { %v2763_v56 = vmul.f32 1.442695, %v2760_v55 }
0x14c6   :  { %v2852_v30 = vpop.permute.xlu1 %2851 }
0x14c7   :  { %4276 = vpow2.f32 %v2763_v56  ;;  %4031 = vmatpush3.msra.mxu1 %v2852_v30 }
0x14c8   :  { %4040 = vmatprep.subr.mxu1 %v4322_v46 }
0x14ca   :  { %v2930_v5 = vpop.permute.xlu1 %2929 }
0x14cd   :  { %v4275_v57 = vpop.eup %4274 }
0x14ce   :  { %v2765_v59 = vsel %vm193_vm6, %v4275_v57, 0.0  ;;  %v3008_v9 = vpop.permute.xlu1 %3007 }
0x14cf   :  { %2766 = vadd.xlane.f32.xlu0 %v2765_v59 }
0x14d1   :  { %v4277_v3 = vpop.eup %4276 }
0x14d2   :  { %v2768_v32 = vsel %vm193_vm6, %v4277_v3, 0.0  ;;  %v3006_v58 = vpop.permute.xlu1 %3005 }
0x14d3   :  { %2769 = vadd.xlane.f32.xlu0 %v2768_v32 }
0x14e9   :  { %2927 = vrot.lane.b32.xlu0 %v4717_v2, %s4333_s11 }
0x155c   :  { %v2767_v63 = vpop.xlane.xlu0 %2766 }
0x155d   :  { %4278 = vrcp.f32 %v2767_v63 }
0x1560   :  { %v2770_v4 = vpop.xlane.xlu0 %2769 }
0x1561   :  { %4280 = vrcp.f32 %v2770_v4 }
0x1564   :  { %v2928_v2 = vpop.permute.xlu0 %2927 }
0x1567   :  { %v4279_v6 = vpop.eup %4278 }
0x1568   :  { %v2773_v7 = vmul.f32 %v4279_v6, %v4275_v57 }
0x156a   :  { %4028 = vmatmul.mubr.msk.f32.vlgmr.msra.gmra.mrb[26].mxu0 %vm193_vm6, %v2773_v7 }
0x156b   :  { %v4281_v8 = vpop.eup %4280  ;;  %4036 = vmatpush3.xpose.msk.msra.mxu0 %vm193_vm6, %v2930_v5  ;;  %4037 = vmatprep.mubr.msk.f32.mxu0 %vm4323_vm5, %v4322_v46 }
0x156c   :  { %v2774_v11 = vmul.f32 %v4281_v8, %v4277_v3  ;;  %4045 = vmatprep.subr.mxu0 %v4322_v46 }
0x156e   :  { %4033 = vmatmul.mubr.msk.f32.vlgmr.msra.gmra.mrb[34].mxu1 %vm193_vm6, %v2774_v11  ;;  %4038 = vmatmul.mubr.msk.f32.vlgmr.msra.gmra.mrb[28].mxu0 %vm193_vm6, %v2928_v2 }
0x156f   :  { %4041 = vmatpush3.xpose.msk.msra.mxu1 %vm193_vm6, %v3008_v9  ;;  %4042 = vmatprep.mubr.msk.f32.mxu1 %vm4323_vm5, %v4322_v46 }
0x1570   :  { %4050 = vmatprep.subr.mxu1 %v4322_v46  ;;  %4047 = vmatprep.mubr.msk.f32.mxu0 %vm4323_vm5, %v4322_v46 }
0x1572   :  { %4043 = vmatmul.mubr.msk.f32.vlgmr.msra.gmra.mrb[36].mxu1 %vm193_vm6, %v3006_v58 }
0x1573   :  { %4052 = vmatprep.mubr.msk.f32.mxu1 %vm4323_vm5, %v4322_v46 }
0x163d   :  { %v2847_v49 = vpop.f32.mrb[26].mxu0 }
0x163e   :  { %v4029_v14 = vpop.f32.mrb[27].mxu0 }
0x1641   :  { %v2923_v15 = vpop.f32.mrb[34].mxu1  ;;  %v3001_v19 = vpop.f32.mrb[28].mxu0 }
0x1642   :  { %v3083_v16 = vmul.f32 0.35355338, %v3001_v19  ;;  %v4034_v18 = vpop.f32.mrb[35].mxu1  ;;  %v4039_v20 = vpop.f32.mrb[29].mxu0 }
0x1644   :  { %v3085_v12 = vsel %vm2081_vm2, %v3083_v16, -1e+09 }
0x1645   :  { %v3079_v22 = vpop.f32.mrb[36].mxu1  ;;  %v3087_v23 = vsel %vm193_vm6, %v3085_v12, -inf }
0x1646   :  { %v3084_v24 = vmul.f32 0.35355338, %v3079_v22  ;;  %3088 = vmax.xlane.f32.xlu0 %v3087_v23  ;;  %v4044_v25 = vpop.f32.mrb[37].mxu1 }
0x1647   :  { %v3459_v25 = vld [vmem:[%s4990_s4 + $0x10] sm:$0xff] }
0x1648   :  { %v3086_v26 = vsel %vm2082_vm3, %v3084_v24, -1e+09 }
0x1649   :  { %v3090_v46 = vsel %vm193_vm6, %v3086_v26, -inf }
0x164a   :  { %3091 = vmax.xlane.f32.xlu1 %v3090_v46  ;;  %v3461_v46 = vld [vmem:[%s4990_s4 + $0x40] sm:$0xff] }
0x165b   :  { %3185 = vrot.lane.b32.xlu1 %v4719_v0, %s4332_s10 }
0x165f   :  { %4201 = vrot.lane.b32.xlu1 %v4654_v1, %s4335_s13 }
0x1663   :  { %4206 = vrot.lane.b32.xlu1 %v4676_v17, %s4335_s13 }
0x1667   :  { %3265 = vrot.lane.b32.xlu1 %v4829_v33, %s4336_s14 }
0x166b   :  { %3273 = vrot.lane.b32.xlu1 %v2923_v15, %s4337_s15 }
0x16d3   :  { %v3089_v54 = vpop.xlane.xlu0 %3088 }
0x16d4   :  { %v3093_v13 = vsub.f32 %v3085_v12, %v3089_v54 }
0x16d6   :  { %v3095_v27 = vmul.f32 1.442695, %v3093_v13  ;;  %v3462_v13 = vld [vmem:[%s4990_s4 + $0x58] sm:$0xff] }
0x16d7   :  { %v3092_v28 = vpop.xlane.xlu1 %3091 }
0x16d8   :  { %4282 = vpow2.f32 %v3095_v27  ;;  %v3094_v29 = vsub.f32 %v3086_v26, %v3092_v28  ;;  %v3460_v26 = vld [vmem:[%s4990_s4 + $0x28] sm:$0xff]  ;;  %v4140_v27 = vpack.c.bf16 %v3462_v13, %v3461_v46  ;;  %v3553_v28 = vld [vmem:[%s4991_s5] sm:$0xff] }
0x16d9   :  { %v4136_v54 = vpack.c.bf16 %v3460_v26, %v3459_v25 }
0x16da   :  { %v3097_v51 = vmul.f32 1.442695, %v3094_v29  ;;  %v3554_v29 = vld [vmem:[%s4991_s5 + $0x8] sm:$0xff] }
0x16db   :  { %v3186_v34 = vpop.permute.xlu1 %3185 }
0x16dc   :  { %4284 = vpow2.f32 %v3097_v51  ;;  %4051 = vmatpush3.msra.mxu1 %v3186_v34  ;;  %v3555_v51 = vld [vmem:[%s4991_s5 + $0x10] sm:$0xff]  ;;  %v4144_v34 = vpack.c.bf16 %v3554_v29, %v3553_v28 }
0x16dd   :  { %4137 = vmatprep.subr.bf16.mxu1 %v4136_v54 }
0x16df   :  { %v4202_v35 = vpop.permute.xlu1 %4201 }
0x16e0   :  { %v4204_v36 = vunpack.i.h.bf16 %v4202_v35  ;;  %v4203_v37 = vunpack.i.l.bf16 %v4202_v35 }
0x16e2   :  { %v4283_v0 = vpop.eup %4282  ;;  %v4128_v39 = vpack.c.bf16 %v4204_v36, %v4203_v37 }
0x16e3   :  { %v3099_v1 = vsel %vm193_vm6, %v4283_v0, 0.0  ;;  %v4207_v40 = vpop.permute.xlu1 %4206 }
0x16e4   :  { %3100 = vadd.xlane.f32.xlu0 %v3099_v1  ;;  %v4209_v41 = vunpack.i.h.bf16 %v4207_v40  ;;  %v4208_v42 = vunpack.i.l.bf16 %v4207_v40 }
0x16e6   :  { %v4285_v17 = vpop.eup %4284  ;;  %v4132_v44 = vpack.c.bf16 %v4209_v41, %v4208_v42 }
0x16e7   :  { %v3102_v10 = vsel %vm193_vm6, %v4285_v17, 0.0  ;;  %v3266_v57 = vpop.permute.xlu1 %3265 }
0x16e8   :  { %3103 = vadd.xlane.f32.xlu0 %v3102_v10  ;;  %v3286_v6 = vsel %vm193_vm6, %v4787_v52, %v3266_v57  ;;  %v3558_v10 = vld [vmem:[%s4991_s5 + $0x28] sm:$0xff]  ;;  %v3735_v57 = vld [vmem:[%s4993_s7 + $0x5] ss:$0 sm:$0xff] }
0x16eb   :  { %v3274_v32 = vpop.permute.xlu1 %3273 }
0x16ec   :  { %v3288_v7 = vsel %vm1551_vm10, %v3286_v6, %v3274_v32  ;;  %v3736_v6 = vld [vmem:[%s4992_s6 + $0x2] ss:$0 sm:$0xff] }
0x16fe   :  { %3109 = vrot.lane.b32.xlu0 %v4711_v60, %s4332_s10 }
0x1702   :  { %3263 = vrot.lane.b32.xlu0 %v4827_v31, %s4336_s14 }
0x1706   :  { %3271 = vrot.lane.b32.xlu0 %v2847_v49, %s4337_s15 }
0x1771   :  { %v3101_v33 = vpop.xlane.xlu0 %3100 }
0x1772   :  { %4286 = vrcp.f32 %v3101_v33 }
0x1775   :  { %v3104_v38 = vpop.xlane.xlu0 %3103 }
0x1776   :  { %4288 = vrcp.f32 %v3104_v38 }
0x1779   :  { %v3110_v43 = vpop.permute.xlu0 %3109 }
0x177a   :  { %4046 = vmatpush3.msra.mxu0 %v3110_v43 }
0x177b   :  { %4129 = vmatprep.subr.bf16.mxu0 %v4128_v39 }
0x177c   :  { %v4287_v60 = vpop.eup %4286 }
0x177d   :  { %v3107_v45 = vmul.f32 %v4287_v60, %v4283_v0  ;;  %v3264_v30 = vpop.permute.xlu0 %3263  ;;  %v3556_v0 = vld [vmem:[%s4991_s5 + $0x18] sm:$0xff] }
0x177e   :  { %v3285_v3 = vsel %vm193_vm6, %v4785_v48, %v3264_v30  ;;  %v4148_v1 = vpack.c.bf16 %v3556_v0, %v3555_v51 }
0x177f   :  { %4048 = vmatmul.mubr.msk.f32.vlgmr.msra.gmra.mrb[30].mxu0 %vm193_vm6, %v3107_v45 }
0x1780   :  { %v4289_v31 = vpop.eup %4288  ;;  %4131 = vmatpush3.bf16.msra.mxu0 %v4128_v39 }
0x1781   :  { %v3108_v50 = vmul.f32 %v4289_v31, %v4285_v17  ;;  %4133 = vmatprep.subr.bf16.mxu0 %v4132_v44  ;;  %v3272_v59 = vpop.permute.xlu0 %3271  ;;  %v3557_v17 = vld [vmem:[%s4991_s5 + $0x20] sm:$0xff] }
0x1782   :  { %v3287_v63 = vsel %vm1551_vm10, %v3285_v3, %v3272_v59  ;;  %v4152_v33 = vpack.c.bf16 %v3558_v10, %v3557_v17 }
0x1783   :  { %4053 = vmatmul.mubr.msk.f32.vlgmr.msra.gmra.mrb[38].mxu1 %vm193_vm6, %v3108_v50 }
0x1784   :  { %4135 = vmatpush3.bf16.msra.mxu0 %v4132_v44  ;;  %4139 = vmatpush3.bf16.msra.mxu1 %v4136_v54 }
0x1785   :  { %4141 = vmatprep.subr.bf16.mxu1 %v4140_v27  ;;  %4145 = vmatprep.subr.bf16.mxu0 %v4144_v34 }
0x1788   :  { %4143 = vmatpush3.bf16.msra.mxu1 %v4140_v27 }
0x1852   :  { %v3181_v47 = vpop.f32.mrb[30].mxu0 }
0x1853   :  { %3279 = vrot.lane.b32.xlu0 %v3181_v47, %s4338_s16  ;;  %v4049_v53 = vpop.f32.mrb[31].mxu0 }
0x1856   :  { %v3257_v55 = vpop.f32.mrb[38].mxu1 }
0x1857   :  { %3281 = vrot.lane.b32.xlu1 %v3257_v55, %s4338_s16  ;;  %v4054_v56 = vpop.f32.mrb[39].mxu1  ;;  %3400 = vrot.lane.b32.xlu0 %v4688_v21, %s4335_s13  ;;  %v3734_v55 = vld [vmem:[%s4993_s7 + $0x2] ss:$0 sm:$0xff] }
0x18c5   :  { %v3280_v4 = vpop.permute.xlu0 %3279 }
0x18c6   :  { %v3289_v5 = vsel %vm1554_vm9, %v3287_v63, %v3280_v4 }
0x18c7   :  { %4063 = vmatprep.mubr.msk.f32.mxu0 %vm44_vm0, %v3289_v5 }
0x18c9   :  { %v3282_v21 = vpop.permute.xlu1 %3281  ;;  %v3401_v48 = vpop.permute.xlu0 %3400 }
0x18ca   :  { %v3290_v8 = vsel %vm1554_vm9, %v3288_v7, %v3282_v21  ;;  %v3559_v7 = vld [vmem:[%s4991_s5 + $0x30] sm:$0xff]  ;;  %v3560_v21 = vld [vmem:[%s4991_s5 + $0x38] sm:$0xff]  ;;  %s4340_s5 = smov [#allocation2]  }
0x18cb   :  { %4064 = vmatmul.mubr.msk.f32.vlgmr.msra.gmra.mrb[32].mxu0 %vm44_vm0, %v3290_v8  ;;  %v4156_v8 = vpack.c.bf16 %v3560_v21, %v3559_v7  ;;  %s3657_s6 = sshll.u32 %s4340_s5, 4  ;;  %s3658_s6 = int_to_ptr.vmem [resolvable:$true] %s3657_s6 }
0x18cc   :  { %4147 = vmatpush3.bf16.msra.mxu0 %v4144_v34  ;;  %p4303_p1 = scmp.lt.s32.totalorder %s3658_s6, %s3658_s6 }
0x18cd   :  { %4149 = vmatprep.subr.bf16.mxu0 %v4148_v1 }
0x18d0   :  { %4151 = vmatpush3.bf16.msra.mxu0 %v4148_v1 }
0x18d1   :  { %4153 = vmatprep.subr.bf16.mxu0 %v4152_v33 }
0x18d4   :  { %4155 = vmatpush3.bf16.msra.mxu0 %v4152_v33 }
0x18d5   :  { %4157 = vmatprep.subr.bf16.mxu0 %v4156_v8 }
0x18d8   :  { %4159 = vmatpush3.bf16.msra.mxu0 %v4156_v8 }
0x199e   :  { %v4065_v9 = vpop.f32.mrb[32].mxu0 }
0x199f   :  { %v3393_v11 = vadd.f32 %v4065_v9, %v4640_v61  ;;  %v3383_v2 = vpop.f32.mrb[33].mxu0 }
0x19a0   :  { %v3392_v58 = vadd.f32 %v3383_v2, %v4642_v62 }
0x19a1   :  { %v4909_v49 = vadd.f32 %v3401_v48, %v3393_v11 }
0x19a2   :  { %v4911_v14 = vadd.f32 %v3401_v48, %v3392_v58 }
0x19a3   :  { %v3410_v52 = vsel %vm44_vm0, %v4909_v49, 0.0 }
0x19a4   :  { %3411 = vadd.xlane.f32.xlu0 %v3410_v52  ;;  %v3407_v15 = vsel %vm44_vm0, %v4911_v14, 0.0 }
0x19a5   :  { %3408 = vadd.xlane.f32.xlu1 %v3407_v15 }
0x19b6   :  { %3645 = vrot.lane.b32.xlu1 %v3736_v6, %s4325_s27  ;;  %s4298_s27 = scalar_lea.vmem %s3658_s6, 256 }
0x19b7   :  { %p4299_p0 = scmp.ne.s32.totalorder %s3658_s6, %s4298_s27  ;;  %p4304_p2 = scmp.lt.s32.totalorder %s4298_s27, %s4298_s27 }
0x19b9   :  { %p4305_p3 = por %p4304_p2, %p4303_p1 }
0x19bb   :  { %p4306_p4 = pnand %p4305_p3, %p4299_p0 }
0x1a31   :  { %v3412_v19 = vpop.xlane.xlu0 %3411 }
0x1a32   :  { %v3414_v16 = vmul.f32 0.03125, %v3412_v19  ;;  %v3409_v18 = vpop.xlane.xlu1 %3408 }
0x1a33   :  { %v3413_v20 = vmul.f32 0.03125, %v3409_v18 }
0x1a34   :  { %v3416_v61 = vsub.f32 %v4909_v49, %v3414_v16 }
0x1a35   :  { %v3415_v62 = vsub.f32 %v4911_v14, %v3413_v20 }
0x1a36   :  { %v3418_v23 = vmul.f32 %v3416_v61, %v3416_v61  ;;  %v3432_v3 = vmul.f32 %v3734_v55, %v3416_v61  ;;  %v3646_v19 = vpop.permute.xlu1 %3645 }
0x1a37   :  { %v3417_v12 = vmul.f32 %v3415_v62, %v3415_v62  ;;  %v3431_v56 = vmul.f32 %v3734_v55, %v3415_v62 }
0x1a38   :  { %v3422_v24 = vsel %vm44_vm0, %v3418_v23, 0.0 }
0x1a39   :  { %v3419_v22 = vsel %vm44_vm0, %v3417_v12, 0.0 }
0x1a3a   :  { %3420 = vadd.xlane.f32.xlu0 %v3419_v22 }
0x1a3e   :  { %3423 = vadd.xlane.f32.xlu0 %v3422_v24 }
0x1ac7   :  { %v3421_v35 = vpop.xlane.xlu0 %3420 }
0x1ac8   :  { %v3425_v36 = vmul.f32 0.032258064, %v3421_v35 }
0x1aca   :  { %4290 = vrsqrt.f32 %v3425_v36  ;;  %vm3435_vm4 = vcmp.eq.f32.partialorder %v3425_v36, inf  ;;  %v3438_v41 = vand.u32 2147483648, %v3425_v36  ;;  %vm3437_vm5 = vcmp.eq.f32.partialorder %v3425_v36, 0.0 }
0x1acb   :  { %v3424_v37 = vpop.xlane.xlu0 %3423 }
0x1acc   :  { %v3426_v38 = vmul.f32 0.032258064, %v3424_v37 }
0x1ace   :  { %4292 = vrsqrt.f32 %v3426_v38  ;;  %vm3442_vm6 = vcmp.eq.f32.partialorder %v3426_v38, inf  ;;  %v3445_v31 = vand.u32 2147483648, %v3426_v38  ;;  %vm3444_vm7 = vcmp.eq.f32.partialorder %v3426_v38, 0.0 }
0x1ad4   :  { %v4291_v39 = vpop.eup %4290 }
0x1ad5   :  { %v3434_v40 = vmul.f32 %v4291_v39, %v3425_v36 }
0x1ad7   :  { %v3436_v42 = vsel %vm3435_vm4, %v3425_v36, %v3434_v40 }
0x1ad8   :  { %v4293_v43 = vpop.eup %4292  ;;  %v3439_v60 = vsel %vm3437_vm5, %v3438_v41, %v3436_v42 }
0x1ad9   :  { %v3441_v44 = vmul.f32 %v4293_v43, %v3426_v38  ;;  %v3447_v45 = vadd.f32 1e-06, %v3439_v60 }
0x1adb   :  { %v3443_v50 = vsel %vm3442_vm6, %v3426_v38, %v3441_v44  ;;  %4294 = vrcp.f32 %v3447_v45 }
0x1adc   :  { %v3446_v47 = vsel %vm3444_vm7, %v3445_v31, %v3443_v50 }
0x1add   :  { %v3448_v53 = vadd.f32 1e-06, %v3446_v47 }
0x1adf   :  { %4296 = vrcp.f32 %v3448_v53 }
0x1ae5   :  { %v4295_v30 = vpop.eup %4294 }
0x1ae6   :  { %v3450_v59 = vmul.f32 %v4295_v30, %v3431_v56 }
0x1ae8   :  { %v3457_v32 = vadd.f32 %v3735_v57, %v3450_v59 }
0x1ae9   :  { %v4297_v63 = vpop.eup %4296 }
0x1aea   :  { %v3452_v4 = vmul.f32 %v4297_v63, %v3432_v3  ;;  %4074 = vmatprep.mubr.msk.f32.mxu1 %vm44_vm0, %v3457_v32 }
0x1aec   :  { %v3458_v5 = vadd.f32 %v3735_v57, %v3452_v4 }
0x1aee   :  { %4075 = vmatmul.mubr.msk.f32.vlgmr.msra.gmra.mrb[40].mxu1 %vm44_vm0, %v3458_v5 }
0x1bc1   :  { %v4076_v9 = vpop.f32.mrb[40].mxu1 }
0x1bc2   :  { %v3548_v48 = vadd.f32 %v4076_v9, %v3736_v6  ;;  %v3542_v11 = vpop.f32.mrb[41].mxu1 }
0x1bc3   :  { %v3543_v2 = vadd.f32 %v3736_v6, %v3542_v11 }
0x1bc4   :  { %v3552_v52 = vmax.f32 %v3548_v48, 0.0 }
0x1bc5   :  { %v3551_v58 = vmax.f32 %v3543_v2, 0.0 }
0x1bc7   :  { %4093 = vmatprep.mubr.msk.f32.mxu0 %vm3561_vm8, %v3551_v58 }
0x1bc8   :  { %4094 = vmatmul.mubr.msk.f32.vlgmr.msra.gmra.mrb[34].mxu0 %vm3561_vm8, %v3552_v52 }
0x1c9b   :  { %v4095_v15 = vpop.f32.mrb[34].mxu0 }
0x1c9c   :  { %v3644_v16 = vadd.f32 %v4095_v15, %v4909_v49  ;;  %v3634_v18 = vpop.f32.mrb[35].mxu0 }
0x1c9d   :  { %v3643_v20 = vadd.f32 %v3634_v18, %v4911_v14 }
0x1c9e   :  { %v3649_v61 = vadd.f32 %v3646_v19, %v3644_v16 }
0x1c9f   :  { %v3648_v62 = vadd.f32 %v3646_v19, %v3643_v20 }
0x1ca0   :  { %3651 = vst.msk [vmem:[#allocation2 + $0x8] sm:$0xff] %vm44_vm0, %v3649_v61 }
0x1ca1   :  { %3650 = vst.msk [vmem:[#allocation2] sm:$0xff] %vm44_vm0, %v3648_v62 }
0x1ca2   :  { %4309 = shalt.err (!%p4306_p4)
}
0x1ca3   :  { %s4310_s10 = scalar_lea.hbm %s4994_s8, 256 }
0x1ca4   :  { %p4311_p5 = scmp.ne.s32.totalorder %s4994_s8, %s4310_s10  ;;  %p4314_p6 = scmp.lt.u32.totalorder %s4310_s10, %s4994_s8 }
0x1ca6   :  { %p4316_p7 = pnand %p4314_p6, %p4311_p5 }
0x1ca8   :  { %4319 = shalt.err (!%p4316_p7)
}
0x1ca9   :  { %s4341_s29 = smov 128  }
0x1caa   :  { %3663 = dma.vmem_to_hbm [thread:$0]  %s3658_s6, 256, %s4994_s8, [#allocation3], %s4341_s29, %s4341_s29, %s4336_s14  }
0x1cab   :  { %4320 = dma.done.wait [#allocation3], 256  }
0x1cac   :  { %4321 = vsyncadd [#allocation3], 4294967040 }
0x1cad   :  { %3667 = vsyncpa [#allocation3], 1 }

</bundles_post_ra>
